<compile_context>
chip_gen: v6e
topology: v6e:2x2x1
jax: 0.10.0
libtpu: 0.0.40
codegen_flags: <defaults>
</compile_context>

<pallas_src>
import numpy as np
import jax
import jax.numpy as jnp
from jax import lax
from jax.experimental import pallas as pl
from jax.experimental.pallas import tpu as pltpu

# ---------------- configuration (small, deterministic) ----------------
PAD_TAG = "<PAD>"
UNLABELED_TAG = "<UNLABELED>"
label2idx = {PAD_TAG: 0, UNLABELED_TAG: 1, "O": 2, "B-PER": 3, "I-PER": 4,
             "B-LOC": 5, "I-LOC": 6, "B-ORG": 7}
NUM_TAGS = len(label2idx)            # 8
PAD_INDEX = label2idx[PAD_TAG]

B = 2                 # batch
S = 8                 # sequence length (words)
W = 6                 # max chars per word
WORD_VOCAB = 30
CHAR_VOCAB = 20
WORD_EMB_DIM = 16
CHAR_EMB_DIM = 8
CHAR_HIDDEN_DIM = 8   # bidirectional char LSTM output (HC per direction)
HIDDEN_DIM = 32       # bidirectional word LSTM output (H per direction)
H = HIDDEN_DIM // 2   # 16
HC = CHAR_HIDDEN_DIM // 2
D_IN = WORD_EMB_DIM + CHAR_HIDDEN_DIM   # 24


# ---------------- parameter init (deterministic, in-script) ----------------
def init_params(key):
    ks = iter(jax.random.split(key, 32))

    def nrm(shape, scale=0.1):
        return scale * jax.random.normal(next(ks), shape, dtype=jnp.float32)

    p = {}
    p["word_emb"] = nrm((WORD_VOCAB, WORD_EMB_DIM), 1.0)
    p["char_emb"] = nrm((CHAR_VOCAB, CHAR_EMB_DIM), 1.0)
    # char BiLSTM (per direction), PyTorch weight layout (4H, D) / (4H, H)
    for d in ("f", "b"):
        p[f"char_wih_{d}"] = nrm((4 * HC, CHAR_EMB_DIM))
        p[f"char_whh_{d}"] = nrm((4 * HC, HC))
        p[f"char_b_{d}"] = nrm((4 * HC,))
    # word-level BiLSTM
    for d in ("f", "b"):
        p[f"wih_{d}"] = nrm((4 * H, D_IN))
        p[f"whh_{d}"] = nrm((4 * H, H))
        p[f"bih_{d}"] = nrm((4 * H,))
        p[f"bhh_{d}"] = nrm((4 * H,))
    # hidden2tag
    p["h2t_w"] = nrm((NUM_TAGS, HIDDEN_DIM))
    p["h2t_b"] = nrm((NUM_TAGS,))
    # CRF params (reset_parameters() overwrites the -10000 rows with xavier_normal_)
    p["transitions"] = nrm((NUM_TAGS, NUM_TAGS), 1.0)
    p["start_transitions"] = nrm((NUM_TAGS,), 1.0)
    p["end_transitions"] = nrm((NUM_TAGS,), 1.0)
    return p


# ---------------- char BiLSTM (plain-JAX glue) ----------------
# TODO(synk): CharBiLSTM's definition is not provided with the module; this is
# a standard masked bidirectional char LSTM returning last hidden per word.
def lstm_cell_jax(x_t, h, c, wih, whh, b):
    gates = x_t @ wih.T + h @ whh.T + b          # PyTorch gate order: i, f, g, o
    i_g, f_g, g_g, o_g = jnp.split(gates, 4, axis=-1)
    c_new = jax.nn.sigmoid(f_g) * c + jax.nn.sigmoid(i_g) * jnp.tanh(g_g)
    h_new = jax.nn.sigmoid(o_g) * jnp.tanh(c_new)
    return h_new, c_new


def char_bilstm_last_hiddens(char_seq, char_len, p):
    B_, S_, W_ = char_seq.shape
    emb = p["char_emb"][char_seq].reshape(B_ * S_, W_, CHAR_EMB_DIM)
    lens = char_len.reshape(B_ * S_)
    emb_tm = jnp.transpose(emb, (1, 0, 2))       # (W, B*S, E)
    h0 = jnp.zeros((B_ * S_, HC), jnp.float32)
    c0 = jnp.zeros_like(h0)

    def fwd_step(carry, inp):
        h, c, h_last = carry
        x_t, t = inp
        h_new, c_new = lstm_cell_jax(x_t, h, c, p["char_wih_f"],
                                     p["char_whh_f"], p["char_b_f"])
        valid = (t < lens)[:, None]
        h = jnp.where(valid, h_new, h)
        c = jnp.where(valid, c_new, c)
        h_last = jnp.where((t == lens - 1)[:, None], h, h_last)
        return (h, c, h_last), None

    (_, _, h_fwd), _ = lax.scan(fwd_step, (h0, c0, h0),
                                (emb_tm, jnp.arange(W_)))

    def bwd_step(carry, inp):
        h, c = carry
        x_t, t = inp
        h_new, c_new = lstm_cell_jax(x_t, h, c, p["char_wih_b"],
                                     p["char_whh_b"], p["char_b_b"])
        valid = (t < lens)[:, None]
        h = jnp.where(valid, h_new, h)
        c = jnp.where(valid, c_new, c)
        return (h, c), None

    (h_bwd, _), _ = lax.scan(bwd_step, (h0, c0),
                             (emb_tm[::-1], jnp.arange(W_ - 1, -1, -1)))
    out = jnp.concatenate([h_fwd, h_bwd], axis=-1)      # (B*S, CHAR_HIDDEN_DIM)
    return out.reshape(B_, S_, CHAR_HIDDEN_DIM)


# ---------------- Pallas kernel: fused BiLSTM + hidden2tag + Viterbi ---------
# Inputs (all whole-array VMEM blocks, 7 operands):
#   x_pair   : (S*B, 2*D_IN) f32   row (s,b) = [x(s,b) | x(S-1-s,b)]
#   wih_pair : (2*D_IN, 8H)  bf16  block input weights, gate-grouped columns
#   whh_pair : (2H, 8H)      bf16  block-diagonal recurrent weights
#   b_pair   : (1, 8H)       f32   b_ih + b_hh per direction, gate-grouped
#   w_out    : (2H, 2T)      bf16  hidden2tag, cols [0:T]=fwd half, [T:2T]=bwd
#   crf      : (T+3, T)      f32   rows 0:T = transitions.T, then start, end, b_out
#   mask     : (B, S)        int32
# Outputs:
#   score : (B, T)       f32  final Viterbi scores (incl. end_transitions)
#   hist  : (S-1, B, T)  i32  backpointers for timesteps 1..S-1
def bilstm_crf_kernel(x_ref, wih_ref, whh_ref, b_ref, wout_ref, crf_ref,
                      mask_ref, score_ref, hist_ref):
    B_, S_ = mask_ref.shape
    T_ = score_ref.shape[1]
    H2 = whh_ref.shape[0]                       # 2H (fwd+bwd state width)

    # ---- hoisted input projection: ONE (S*B, 2D) @ (2D, 8H) bf16 matmul ----
    xp = (jnp.dot(x_ref[...].astype(jnp.bfloat16), wih_ref[...],
                  preferred_element_type=jnp.float32)
          + b_ref[...])                          # (S*B, 8H) f32

    whh = whh_ref[...]                           # (2H, 8H) bf16, block-diagonal
    wout = wout_ref[...]                         # (2H, 2T) bf16

    # ---- fused fwd+bwd recurrence: S serial steps, 128-lane gate vectors ----
    h = jnp.zeros((B_, H2), jnp.float32)         # [h_fwd | h_bwd]
    c = jnp.zeros((B_, H2), jnp.float32)
    hs = []
    for s in range(S_):
        gates = (xp[s * B_:(s + 1) * B_, :]
                 + jnp.dot(h.astype(jnp.bfloat16), whh,
                           preferred_element_type=jnp.float32))    # (B, 8H)
        sig = jax.nn.sigmoid(gates)              # one whole-vreg EUP push
        tnh = jnp.tanh(gates)                    # one whole-vreg EUP push
        i_g = sig[:, 0:H2]
        f_g = sig[:, H2:2 * H2]
        g_g = tnh[:, 2 * H2:3 * H2]
        o_g = sig[:, 3 * H2:4 * H2]
        c = f_g * c + i_g * g_g
        h = o_g * jnp.tanh(c)
        hs.append(h)                             # hs[s] = [h_f(s) | h_b(S-1-s)]

    # ---- hidden2tag: tiny per-step matmuls, all off the serial chain, in regs
    projs = [jnp.dot(h_s.astype(jnp.bfloat16), wout,
                     preferred_element_type=jnp.float32) for h_s in hs]  # (B, 2T)

    crf = crf_ref[...]                           # (T+3, T)
    transT = crf[0:T_, :]                        # transT[j, k] = transitions[k, j]
    start = crf[T_:T_ + 1, :]                    # (1, T)
    end = crf[T_ + 1:T_ + 2, :]                  # (1, T)
    b_out = crf[T_ + 2:T_ + 3, :]                # (1, T)

    def feat(t):
        # lstm_out(t) = [h_f(t) | h_b(t)]: fwd half lives in projs[t],
        # bwd half in projs[S-1-t] (it was computed at fused step S-1-t).
        return projs[t][:, 0:T_] + projs[S_ - 1 - t][:, T_:2 * T_] + b_out

    valid = mask_ref[...] != 0                   # (B, S), loaded/compared once

    # ---- Viterbi recursion (unrolled; matches _viterbi_tags exactly) ----
    trans_b = transT[None, :, :]                                 # hoisted (1,T,T)
    iota_k = lax.broadcasted_iota(jnp.int32, (B_, T_, T_), 2)    # hoisted
    score = start + feat(0)                                      # (B, T)
    bptr = []
    for i in range(1, S_):
        # full[b, j, k] = score[b, k] + transitions[k, j]
        full = score[:, None, :] + trans_b                       # (B, T, T)
        best = jnp.max(full, axis=-1)                            # (B, T)
        # first-index argmax over k (same tie-break as torch.max); jnp.argmax
        # avoided on purpose (variadic reduce not guaranteed to lower in Mosaic).
        idx = jnp.min(jnp.where(full == best[..., None], iota_k, T_),
                      axis=-1).astype(jnp.int32)
        next_score = best + feat(i)
        score = jnp.where(valid[:, i:i + 1], next_score, score)
        bptr.append(idx)

    score_ref[...] = score + end
    hist_ref[...] = jnp.stack(bptr, axis=0)      # ONE store, (S-1, B, T)


def bilstm_crf_call(x_pair, wih_pair, whh_pair, b_pair, w_out_pack, crf_pack,
                    mask_i):
    B_, S_ = mask_i.shape
    T_ = crf_pack.shape[1]
    return pl.pallas_call(
        bilstm_crf_kernel,
        out_shape=(jax.ShapeDtypeStruct((B_, T_), jnp.float32),
                   jax.ShapeDtypeStruct((S_ - 1, B_, T_), jnp.int32)),
        in_specs=[pl.BlockSpec(memory_space=pltpu.MemorySpace.VMEM)] * 7,
        out_specs=(pl.BlockSpec(memory_space=pltpu.MemorySpace.VMEM),
                   pl.BlockSpec(memory_space=pltpu.MemorySpace.VMEM)),
    )(x_pair, wih_pair, whh_pair, b_pair, w_out_pack, crf_pack, mask_i)


# ---------------- weight packing helpers (wrapper-side layout plumbing) ------
def pack_dirs_by_gate(w_f_t, w_b_t):
    """w_f_t:(Rf,4H), w_b_t:(Rb,4H) with PyTorch gate order i|f|g|o on columns
    -> (Rf+Rb, 8H) block matrix whose columns are grouped per gate as
    [i_f|i_b|f_f|f_b|g_f|g_b|o_f|o_b]; top Rf rows feed only *_f columns,
    bottom Rb rows only *_b columns."""
    Rf, G4 = w_f_t.shape
    Rb = w_b_t.shape[0]
    Hh = G4 // 4
    wf = w_f_t.reshape(Rf, 4, 1, Hh)
    wb = w_b_t.reshape(Rb, 4, 1, Hh)
    top = jnp.concatenate([wf, jnp.zeros_like(wf)], axis=2).reshape(Rf, 8 * Hh)
    bot = jnp.concatenate([jnp.zeros_like(wb), wb], axis=2).reshape(Rb, 8 * Hh)
    return jnp.concatenate([top, bot], axis=0)


def pack_bias_by_gate(b_f4, b_b4):
    Hh = b_f4.shape[0] // 4
    return jnp.concatenate([b_f4.reshape(4, 1, Hh), b_b4.reshape(4, 1, Hh)],
                           axis=1).reshape(1, 8 * Hh)


# ---------------- host backtrace (same semantics as the torch Python loop) ---
# NOTE: _viterbi_tags (used by forward()) walks ALL S-1 history entries — no
# truncation to seq_end (that only happens in _restricted_viterbi_tags) — so
# this backtrace is faithful to the spec.
def viterbi_backtrace(score, history):
    score = np.asarray(score)
    history = np.asarray(history)            # (S-1, B, T)
    B_ = score.shape[0]
    Sm1 = history.shape[0]
    best_tags_list = []
    for idx in range(B_):
        best_last_tag = int(np.argmax(score[idx]))
        best_tags = [best_last_tag]
        for i in range(Sm1 - 1, -1, -1):     # reversed(history), all S-1 steps
            best_last_tag = int(history[i, idx, best_tags[-1]])
            best_tags.append(best_last_tag)
        best_tags.reverse()
        best_tags_list.append(best_tags)
    return best_tags_list


# ---------------- full forward (≈ BiLSTM_Hard_CRF.forward) -------------------
@jax.jit
def forward_device(word_seq, char_seq, char_len, label_seq, p):
    inputs_word_emb = p["word_emb"][word_seq]                        # (B, S, Ew)
    inputs_char_emb = char_bilstm_last_hiddens(char_seq, char_len, p)
    x = jnp.concatenate([inputs_word_emb, inputs_char_emb], axis=2)  # dropout p=0
    mask_i = (label_seq != PAD_INDEX).astype(jnp.int32)              # (B, S)

    # time-major; pair fwd step t with bwd step S-1-t along the feature axis
    x_tm = jnp.transpose(x, (1, 0, 2)).astype(jnp.float32)           # (S, B, D)
    x_pair = jnp.concatenate([x_tm, x_tm[::-1]], axis=-1).reshape(S * B, 2 * D_IN)

    # block weights with gate-grouped 8H axis; bf16 operands for the MXU
    wih_pair = pack_dirs_by_gate(p["wih_f"].T, p["wih_b"].T).astype(jnp.bfloat16)
    whh_pair = pack_dirs_by_gate(p["whh_f"].T, p["whh_b"].T).astype(jnp.bfloat16)
    b_pair = pack_bias_by_gate(p["bih_f"] + p["bhh_f"],
                               p["bih_b"] + p["bhh_b"]).astype(jnp.float32)

    # hidden2tag packed as (2H, 2T): cols [0:T] use the fwd half of the state,
    # cols [T:2T] the bwd half.
    w_out_t = p["h2t_w"].T                                           # (2H, T)
    zH = jnp.zeros((H, NUM_TAGS), jnp.float32)
    w_out_pack = jnp.concatenate(
        [jnp.concatenate([w_out_t[:H], zH], axis=0),
         jnp.concatenate([zH, w_out_t[H:]], axis=0)],
        axis=1).astype(jnp.bfloat16)                                 # (2H, 2T)

    # CRF + tail-bias slab: rows 0:T = transitions.T, then start, end, h2t bias
    crf_pack = jnp.concatenate(
        [p["transitions"].T,
         p["start_transitions"].reshape(1, NUM_TAGS),
         p["end_transitions"].reshape(1, NUM_TAGS),
         p["h2t_b"].reshape(1, NUM_TAGS)], axis=0).astype(jnp.float32)

    score, history = bilstm_crf_call(x_pair, wih_pair, whh_pair, b_pair,
                                     w_out_pack, crf_pack, mask_i)
    return score, history


def forward(batch, p):
    word_seq, char_seq, char_len, label_seq = batch
    score, history = forward_device(word_seq, char_seq, char_len, label_seq, p)
    jax.block_until_ready((score, history))
    # TODO(synk): the per-batch data-dependent backtracking loop of
    # _viterbi_tags has no clean Pallas equivalent; done on host (numpy).
    return viterbi_backtrace(score, history)


if __name__ == "__main__":
    key = jax.random.PRNGKey(0)
    pkey, k1, k2, k3 = jax.random.split(key, 4)
    params = init_params(pkey)

    word_seq = jax.random.randint(k1, (B, S), 1, WORD_VOCAB, dtype=jnp.int32)
    char_seq = jax.random.randint(k2, (B, S, W), 1, CHAR_VOCAB, dtype=jnp.int32)
    char_len = jax.random.randint(k3, (B, S), 1, W + 1, dtype=jnp.int32)
    label_seq = jnp.array([[2, 3, 4, 2, 5, 0, 0, 0],
                           [3, 2, 2, 6, 7, 2, 2, 0]], dtype=jnp.int32)
    batch = (word_seq, char_seq, char_len, label_seq)

    preds = forward(batch, params)
    assert len(preds) == B and all(len(t) == S for t in preds)
    print("KERNEL_OK")
</pallas_src>

<mosaic_0001>
module attributes {stable_mosaic.version = 11 : i64} {
  func.func @bilstm_crf_kernel(%arg0: memref<16x48xf32, #tpu.memory_space<vmem>>, %arg1: memref<48x128xbf16, #tpu.memory_space<vmem>>, %arg2: memref<32x128xbf16, #tpu.memory_space<vmem>>, %arg3: memref<1x128xf32, #tpu.memory_space<vmem>>, %arg4: memref<32x16xbf16, #tpu.memory_space<vmem>>, %arg5: memref<11x8xf32, #tpu.memory_space<vmem>>, %arg6: memref<2x8xi32, #tpu.memory_space<vmem>>, %arg7: memref<2x8xf32, #tpu.memory_space<vmem>>, %arg8: memref<7x2x8xi32, #tpu.memory_space<vmem>>) attributes {dimension_semantics = [], scalar_prefetch = 0 : i64, scratch_operands = 0 : i64, tpu.core_type = #tpu.core_type<tc>} {
    %c0 = arith.constant 0 : index
    %c0_0 = arith.constant 0 : index
    %0 = vector.load %arg0[%c0, %c0_0] : memref<16x48xf32, #tpu.memory_space<vmem>>, vector<16x48xf32>
    %1 = arith.truncf %0 : vector<16x48xf32> to vector<16x48xbf16>
    %c0_1 = arith.constant 0 : index
    %c0_2 = arith.constant 0 : index
    %2 = vector.load %arg1[%c0_1, %c0_2] : memref<48x128xbf16, #tpu.memory_space<vmem>>, vector<48x128xbf16>
    %cst = arith.constant dense<0.000000e+00> : vector<16x128xf32>
    %3 = tpu.matmul %1, %2, %cst {dimension_numbers = #tpu.dot_dimension_numbers<[1], [0], [0], [1], [0, 0, 1, 1], [], []>} : vector<16x48xbf16>, vector<48x128xbf16>, vector<16x128xf32> -> vector<16x128xf32>
    %c0_3 = arith.constant 0 : index
    %c0_4 = arith.constant 0 : index
    %4 = vector.load %arg3[%c0_3, %c0_4] : memref<1x128xf32, #tpu.memory_space<vmem>>, vector<1x128xf32>
    %5 = vector.broadcast %4 : vector<1x128xf32> to vector<16x128xf32>
    %6 = arith.addf %3, %5 : vector<16x128xf32>
    %c0_5 = arith.constant 0 : index
    %c0_6 = arith.constant 0 : index
    %7 = vector.load %arg2[%c0_5, %c0_6] : memref<32x128xbf16, #tpu.memory_space<vmem>>, vector<32x128xbf16>
    %c0_7 = arith.constant 0 : index
    %c0_8 = arith.constant 0 : index
    %8 = vector.load %arg4[%c0_7, %c0_8] : memref<32x16xbf16, #tpu.memory_space<vmem>>, vector<32x16xbf16>
    %cst_9 = arith.constant 0.000000e+00 : f32
    %9 = vector.broadcast %cst_9 : f32 to vector<2x32xf32>
    %cst_10 = arith.constant 0.000000e+00 : f32
    %10 = vector.broadcast %cst_10 : f32 to vector<2x32xf32>
    %11 = vector.extract_strided_slice %6 {offsets = [0, 0], sizes = [2, 128], strides = [1, 1]} : vector<16x128xf32> to vector<2x128xf32>
    %12 = arith.truncf %9 : vector<2x32xf32> to vector<2x32xbf16>
    %cst_11 = arith.constant dense<0.000000e+00> : vector<2x128xf32>
    %13 = tpu.matmul %12, %7, %cst_11 {dimension_numbers = #tpu.dot_dimension_numbers<[1], [0], [0], [1], [0, 0, 1, 1], [], []>} : vector<2x32xbf16>, vector<32x128xbf16>, vector<2x128xf32> -> vector<2x128xf32>
    %14 = arith.addf %11, %13 : vector<2x128xf32>
    %15 = arith.negf %14 : vector<2x128xf32>
    %16 = math.exp %15 : vector<2x128xf32>
    %cst_12 = arith.constant 1.000000e+00 : f32
    %17 = vector.broadcast %cst_12 : f32 to vector<2x128xf32>
    %18 = arith.addf %17, %16 : vector<2x128xf32>
    %19 = arith.divf %17, %18 : vector<2x128xf32>
    %20 = math.tanh %14 : vector<2x128xf32>
    %21 = vector.extract_strided_slice %19 {offsets = [0, 0], sizes = [2, 32], strides = [1, 1]} : vector<2x128xf32> to vector<2x32xf32>
    %22 = vector.extract_strided_slice %19 {offsets = [0, 32], sizes = [2, 32], strides = [1, 1]} : vector<2x128xf32> to vector<2x32xf32>
    %23 = vector.extract_strided_slice %20 {offsets = [0, 64], sizes = [2, 32], strides = [1, 1]} : vector<2x128xf32> to vector<2x32xf32>
    %24 = vector.extract_strided_slice %19 {offsets = [0, 96], sizes = [2, 32], strides = [1, 1]} : vector<2x128xf32> to vector<2x32xf32>
    %25 = arith.mulf %22, %10 : vector<2x32xf32>
    %26 = arith.mulf %21, %23 : vector<2x32xf32>
    %27 = arith.addf %25, %26 : vector<2x32xf32>
    %28 = math.tanh %27 : vector<2x32xf32>
    %29 = arith.mulf %24, %28 : vector<2x32xf32>
    %30 = vector.extract_strided_slice %6 {offsets = [2, 0], sizes = [2, 128], strides = [1, 1]} : vector<16x128xf32> to vector<2x128xf32>
    %31 = arith.truncf %29 : vector<2x32xf32> to vector<2x32xbf16>
    %cst_13 = arith.constant dense<0.000000e+00> : vector<2x128xf32>
    %32 = tpu.matmul %31, %7, %cst_13 {dimension_numbers = #tpu.dot_dimension_numbers<[1], [0], [0], [1], [0, 0, 1, 1], [], []>} : vector<2x32xbf16>, vector<32x128xbf16>, vector<2x128xf32> -> vector<2x128xf32>
    %33 = arith.addf %30, %32 : vector<2x128xf32>
    %34 = arith.negf %33 : vector<2x128xf32>
    %35 = math.exp %34 : vector<2x128xf32>
    %cst_14 = arith.constant 1.000000e+00 : f32
    %36 = vector.broadcast %cst_14 : f32 to vector<2x128xf32>
    %37 = arith.addf %36, %35 : vector<2x128xf32>
    %38 = arith.divf %36, %37 : vector<2x128xf32>
    %39 = math.tanh %33 : vector<2x128xf32>
    %40 = vector.extract_strided_slice %38 {offsets = [0, 0], sizes = [2, 32], strides = [1, 1]} : vector<2x128xf32> to vector<2x32xf32>
    %41 = vector.extract_strided_slice %38 {offsets = [0, 32], sizes = [2, 32], strides = [1, 1]} : vector<2x128xf32> to vector<2x32xf32>
    %42 = vector.extract_strided_slice %39 {offsets = [0, 64], sizes = [2, 32], strides = [1, 1]} : vector<2x128xf32> to vector<2x32xf32>
    %43 = vector.extract_strided_slice %38 {offsets = [0, 96], sizes = [2, 32], strides = [1, 1]} : vector<2x128xf32> to vector<2x32xf32>
    %44 = arith.mulf %41, %27 : vector<2x32xf32>
    %45 = arith.mulf %40, %42 : vector<2x32xf32>
    %46 = arith.addf %44, %45 : vector<2x32xf32>
    %47 = math.tanh %46 : vector<2x32xf32>
    %48 = arith.mulf %43, %47 : vector<2x32xf32>
    %49 = vector.extract_strided_slice %6 {offsets = [4, 0], sizes = [2, 128], strides = [1, 1]} : vector<16x128xf32> to vector<2x128xf32>
    %50 = arith.truncf %48 : vector<2x32xf32> to vector<2x32xbf16>
    %cst_15 = arith.constant dense<0.000000e+00> : vector<2x128xf32>
    %51 = tpu.matmul %50, %7, %cst_15 {dimension_numbers = #tpu.dot_dimension_numbers<[1], [0], [0], [1], [0, 0, 1, 1], [], []>} : vector<2x32xbf16>, vector<32x128xbf16>, vector<2x128xf32> -> vector<2x128xf32>
    %52 = arith.addf %49, %51 : vector<2x128xf32>
    %53 = arith.negf %52 : vector<2x128xf32>
    %54 = math.exp %53 : vector<2x128xf32>
    %cst_16 = arith.constant 1.000000e+00 : f32
    %55 = vector.broadcast %cst_16 : f32 to vector<2x128xf32>
    %56 = arith.addf %55, %54 : vector<2x128xf32>
    %57 = arith.divf %55, %56 : vector<2x128xf32>
    %58 = math.tanh %52 : vector<2x128xf32>
    %59 = vector.extract_strided_slice %57 {offsets = [0, 0], sizes = [2, 32], strides = [1, 1]} : vector<2x128xf32> to vector<2x32xf32>
    %60 = vector.extract_strided_slice %57 {offsets = [0, 32], sizes = [2, 32], strides = [1, 1]} : vector<2x128xf32> to vector<2x32xf32>
    %61 = vector.extract_strided_slice %58 {offsets = [0, 64], sizes = [2, 32], strides = [1, 1]} : vector<2x128xf32> to vector<2x32xf32>
    %62 = vector.extract_strided_slice %57 {offsets = [0, 96], sizes = [2, 32], strides = [1, 1]} : vector<2x128xf32> to vector<2x32xf32>
    %63 = arith.mulf %60, %46 : vector<2x32xf32>
    %64 = arith.mulf %59, %61 : vector<2x32xf32>
    %65 = arith.addf %63, %64 : vector<2x32xf32>
    %66 = math.tanh %65 : vector<2x32xf32>
    %67 = arith.mulf %62, %66 : vector<2x32xf32>
    %68 = vector.extract_strided_slice %6 {offsets = [6, 0], sizes = [2, 128], strides = [1, 1]} : vector<16x128xf32> to vector<2x128xf32>
    %69 = arith.truncf %67 : vector<2x32xf32> to vector<2x32xbf16>
    %cst_17 = arith.constant dense<0.000000e+00> : vector<2x128xf32>
    %70 = tpu.matmul %69, %7, %cst_17 {dimension_numbers = #tpu.dot_dimension_numbers<[1], [0], [0], [1], [0, 0, 1, 1], [], []>} : vector<2x32xbf16>, vector<32x128xbf16>, vector<2x128xf32> -> vector<2x128xf32>
    %71 = arith.addf %68, %70 : vector<2x128xf32>
    %72 = arith.negf %71 : vector<2x128xf32>
    %73 = math.exp %72 : vector<2x128xf32>
    %cst_18 = arith.constant 1.000000e+00 : f32
    %74 = vector.broadcast %cst_18 : f32 to vector<2x128xf32>
    %75 = arith.addf %74, %73 : vector<2x128xf32>
    %76 = arith.divf %74, %75 : vector<2x128xf32>
    %77 = math.tanh %71 : vector<2x128xf32>
    %78 = vector.extract_strided_slice %76 {offsets = [0, 0], sizes = [2, 32], strides = [1, 1]} : vector<2x128xf32> to vector<2x32xf32>
    %79 = vector.extract_strided_slice %76 {offsets = [0, 32], sizes = [2, 32], strides = [1, 1]} : vector<2x128xf32> to vector<2x32xf32>
    %80 = vector.extract_strided_slice %77 {offsets = [0, 64], sizes = [2, 32], strides = [1, 1]} : vector<2x128xf32> to vector<2x32xf32>
    %81 = vector.extract_strided_slice %76 {offsets = [0, 96], sizes = [2, 32], strides = [1, 1]} : vector<2x128xf32> to vector<2x32xf32>
    %82 = arith.mulf %79, %65 : vector<2x32xf32>
    %83 = arith.mulf %78, %80 : vector<2x32xf32>
    %84 = arith.addf %82, %83 : vector<2x32xf32>
    %85 = math.tanh %84 : vector<2x32xf32>
    %86 = arith.mulf %81, %85 : vector<2x32xf32>
    %87 = vector.extract_strided_slice %6 {offsets = [8, 0], sizes = [2, 128], strides = [1, 1]} : vector<16x128xf32> to vector<2x128xf32>
    %88 = arith.truncf %86 : vector<2x32xf32> to vector<2x32xbf16>
    %cst_19 = arith.constant dense<0.000000e+00> : vector<2x128xf32>
    %89 = tpu.matmul %88, %7, %cst_19 {dimension_numbers = #tpu.dot_dimension_numbers<[1], [0], [0], [1], [0, 0, 1, 1], [], []>} : vector<2x32xbf16>, vector<32x128xbf16>, vector<2x128xf32> -> vector<2x128xf32>
    %90 = arith.addf %87, %89 : vector<2x128xf32>
    %91 = arith.negf %90 : vector<2x128xf32>
    %92 = math.exp %91 : vector<2x128xf32>
    %cst_20 = arith.constant 1.000000e+00 : f32
    %93 = vector.broadcast %cst_20 : f32 to vector<2x128xf32>
    %94 = arith.addf %93, %92 : vector<2x128xf32>
    %95 = arith.divf %93, %94 : vector<2x128xf32>
    %96 = math.tanh %90 : vector<2x128xf32>
    %97 = vector.extract_strided_slice %95 {offsets = [0, 0], sizes = [2, 32], strides = [1, 1]} : vector<2x128xf32> to vector<2x32xf32>
    %98 = vector.extract_strided_slice %95 {offsets = [0, 32], sizes = [2, 32], strides = [1, 1]} : vector<2x128xf32> to vector<2x32xf32>
    %99 = vector.extract_strided_slice %96 {offsets = [0, 64], sizes = [2, 32], strides = [1, 1]} : vector<2x128xf32> to vector<2x32xf32>
    %100 = vector.extract_strided_slice %95 {offsets = [0, 96], sizes = [2, 32], strides = [1, 1]} : vector<2x128xf32> to vector<2x32xf32>
    %101 = arith.mulf %98, %84 : vector<2x32xf32>
    %102 = arith.mulf %97, %99 : vector<2x32xf32>
    %103 = arith.addf %101, %102 : vector<2x32xf32>
    %104 = math.tanh %103 : vector<2x32xf32>
    %105 = arith.mulf %100, %104 : vector<2x32xf32>
    %106 = vector.extract_strided_slice %6 {offsets = [10, 0], sizes = [2, 128], strides = [1, 1]} : vector<16x128xf32> to vector<2x128xf32>
    %107 = arith.truncf %105 : vector<2x32xf32> to vector<2x32xbf16>
    %cst_21 = arith.constant dense<0.000000e+00> : vector<2x128xf32>
    %108 = tpu.matmul %107, %7, %cst_21 {dimension_numbers = #tpu.dot_dimension_numbers<[1], [0], [0], [1], [0, 0, 1, 1], [], []>} : vector<2x32xbf16>, vector<32x128xbf16>, vector<2x128xf32> -> vector<2x128xf32>
    %109 = arith.addf %106, %108 : vector<2x128xf32>
    %110 = arith.negf %109 : vector<2x128xf32>
    %111 = math.exp %110 : vector<2x128xf32>
    %cst_22 = arith.constant 1.000000e+00 : f32
    %112 = vector.broadcast %cst_22 : f32 to vector<2x128xf32>
    %113 = arith.addf %112, %111 : vector<2x128xf32>
    %114 = arith.divf %112, %113 : vector<2x128xf32>
    %115 = math.tanh %109 : vector<2x128xf32>
    %116 = vector.extract_strided_slice %114 {offsets = [0, 0], sizes = [2, 32], strides = [1, 1]} : vector<2x128xf32> to vector<2x32xf32>
    %117 = vector.extract_strided_slice %114 {offsets = [0, 32], sizes = [2, 32], strides = [1, 1]} : vector<2x128xf32> to vector<2x32xf32>
    %118 = vector.extract_strided_slice %115 {offsets = [0, 64], sizes = [2, 32], strides = [1, 1]} : vector<2x128xf32> to vector<2x32xf32>
    %119 = vector.extract_strided_slice %114 {offsets = [0, 96], sizes = [2, 32], strides = [1, 1]} : vector<2x128xf32> to vector<2x32xf32>
    %120 = arith.mulf %117, %103 : vector<2x32xf32>
    %121 = arith.mulf %116, %118 : vector<2x32xf32>
    %122 = arith.addf %120, %121 : vector<2x32xf32>
    %123 = math.tanh %122 : vector<2x32xf32>
    %124 = arith.mulf %119, %123 : vector<2x32xf32>
    %125 = vector.extract_strided_slice %6 {offsets = [12, 0], sizes = [2, 128], strides = [1, 1]} : vector<16x128xf32> to vector<2x128xf32>
    %126 = arith.truncf %124 : vector<2x32xf32> to vector<2x32xbf16>
    %cst_23 = arith.constant dense<0.000000e+00> : vector<2x128xf32>
    %127 = tpu.matmul %126, %7, %cst_23 {dimension_numbers = #tpu.dot_dimension_numbers<[1], [0], [0], [1], [0, 0, 1, 1], [], []>} : vector<2x32xbf16>, vector<32x128xbf16>, vector<2x128xf32> -> vector<2x128xf32>
    %128 = arith.addf %125, %127 : vector<2x128xf32>
    %129 = arith.negf %128 : vector<2x128xf32>
    %130 = math.exp %129 : vector<2x128xf32>
    %cst_24 = arith.constant 1.000000e+00 : f32
    %131 = vector.broadcast %cst_24 : f32 to vector<2x128xf32>
    %132 = arith.addf %131, %130 : vector<2x128xf32>
    %133 = arith.divf %131, %132 : vector<2x128xf32>
    %134 = math.tanh %128 : vector<2x128xf32>
    %135 = vector.extract_strided_slice %133 {offsets = [0, 0], sizes = [2, 32], strides = [1, 1]} : vector<2x128xf32> to vector<2x32xf32>
    %136 = vector.extract_strided_slice %133 {offsets = [0, 32], sizes = [2, 32], strides = [1, 1]} : vector<2x128xf32> to vector<2x32xf32>
    %137 = vector.extract_strided_slice %134 {offsets = [0, 64], sizes = [2, 32], strides = [1, 1]} : vector<2x128xf32> to vector<2x32xf32>
    %138 = vector.extract_strided_slice %133 {offsets = [0, 96], sizes = [2, 32], strides = [1, 1]} : vector<2x128xf32> to vector<2x32xf32>
    %139 = arith.mulf %136, %122 : vector<2x32xf32>
    %140 = arith.mulf %135, %137 : vector<2x32xf32>
    %141 = arith.addf %139, %140 : vector<2x32xf32>
    %142 = math.tanh %141 : vector<2x32xf32>
    %143 = arith.mulf %138, %142 : vector<2x32xf32>
    %144 = vector.extract_strided_slice %6 {offsets = [14, 0], sizes = [2, 128], strides = [1, 1]} : vector<16x128xf32> to vector<2x128xf32>
    %145 = arith.truncf %143 : vector<2x32xf32> to vector<2x32xbf16>
    %cst_25 = arith.constant dense<0.000000e+00> : vector<2x128xf32>
    %146 = tpu.matmul %145, %7, %cst_25 {dimension_numbers = #tpu.dot_dimension_numbers<[1], [0], [0], [1], [0, 0, 1, 1], [], []>} : vector<2x32xbf16>, vector<32x128xbf16>, vector<2x128xf32> -> vector<2x128xf32>
    %147 = arith.addf %144, %146 : vector<2x128xf32>
    %148 = arith.negf %147 : vector<2x128xf32>
    %149 = math.exp %148 : vector<2x128xf32>
    %cst_26 = arith.constant 1.000000e+00 : f32
    %150 = vector.broadcast %cst_26 : f32 to vector<2x128xf32>
    %151 = arith.addf %150, %149 : vector<2x128xf32>
    %152 = arith.divf %150, %151 : vector<2x128xf32>
    %153 = math.tanh %147 : vector<2x128xf32>
    %154 = vector.extract_strided_slice %152 {offsets = [0, 0], sizes = [2, 32], strides = [1, 1]} : vector<2x128xf32> to vector<2x32xf32>
    %155 = vector.extract_strided_slice %152 {offsets = [0, 32], sizes = [2, 32], strides = [1, 1]} : vector<2x128xf32> to vector<2x32xf32>
    %156 = vector.extract_strided_slice %153 {offsets = [0, 64], sizes = [2, 32], strides = [1, 1]} : vector<2x128xf32> to vector<2x32xf32>
    %157 = vector.extract_strided_slice %152 {offsets = [0, 96], sizes = [2, 32], strides = [1, 1]} : vector<2x128xf32> to vector<2x32xf32>
    %158 = arith.mulf %155, %141 : vector<2x32xf32>
    %159 = arith.mulf %154, %156 : vector<2x32xf32>
    %160 = arith.addf %158, %159 : vector<2x32xf32>
    %161 = math.tanh %160 : vector<2x32xf32>
    %162 = arith.mulf %157, %161 : vector<2x32xf32>
    %163 = arith.truncf %29 : vector<2x32xf32> to vector<2x32xbf16>
    %cst_27 = arith.constant dense<0.000000e+00> : vector<2x16xf32>
    %164 = tpu.matmul %163, %8, %cst_27 {dimension_numbers = #tpu.dot_dimension_numbers<[1], [0], [0], [1], [0, 0, 1, 1], [], []>} : vector<2x32xbf16>, vector<32x16xbf16>, vector<2x16xf32> -> vector<2x16xf32>
    %165 = arith.truncf %48 : vector<2x32xf32> to vector<2x32xbf16>
    %cst_28 = arith.constant dense<0.000000e+00> : vector<2x16xf32>
    %166 = tpu.matmul %165, %8, %cst_28 {dimension_numbers = #tpu.dot_dimension_numbers<[1], [0], [0], [1], [0, 0, 1, 1], [], []>} : vector<2x32xbf16>, vector<32x16xbf16>, vector<2x16xf32> -> vector<2x16xf32>
    %167 = arith.truncf %67 : vector<2x32xf32> to vector<2x32xbf16>
    %cst_29 = arith.constant dense<0.000000e+00> : vector<2x16xf32>
    %168 = tpu.matmul %167, %8, %cst_29 {dimension_numbers = #tpu.dot_dimension_numbers<[1], [0], [0], [1], [0, 0, 1, 1], [], []>} : vector<2x32xbf16>, vector<32x16xbf16>, vector<2x16xf32> -> vector<2x16xf32>
    %169 = arith.truncf %86 : vector<2x32xf32> to vector<2x32xbf16>
    %cst_30 = arith.constant dense<0.000000e+00> : vector<2x16xf32>
    %170 = tpu.matmul %169, %8, %cst_30 {dimension_numbers = #tpu.dot_dimension_numbers<[1], [0], [0], [1], [0, 0, 1, 1], [], []>} : vector<2x32xbf16>, vector<32x16xbf16>, vector<2x16xf32> -> vector<2x16xf32>
    %171 = arith.truncf %105 : vector<2x32xf32> to vector<2x32xbf16>
    %cst_31 = arith.constant dense<0.000000e+00> : vector<2x16xf32>
    %172 = tpu.matmul %171, %8, %cst_31 {dimension_numbers = #tpu.dot_dimension_numbers<[1], [0], [0], [1], [0, 0, 1, 1], [], []>} : vector<2x32xbf16>, vector<32x16xbf16>, vector<2x16xf32> -> vector<2x16xf32>
    %173 = arith.truncf %124 : vector<2x32xf32> to vector<2x32xbf16>
    %cst_32 = arith.constant dense<0.000000e+00> : vector<2x16xf32>
    %174 = tpu.matmul %173, %8, %cst_32 {dimension_numbers = #tpu.dot_dimension_numbers<[1], [0], [0], [1], [0, 0, 1, 1], [], []>} : vector<2x32xbf16>, vector<32x16xbf16>, vector<2x16xf32> -> vector<2x16xf32>
    %175 = arith.truncf %143 : vector<2x32xf32> to vector<2x32xbf16>
    %cst_33 = arith.constant dense<0.000000e+00> : vector<2x16xf32>
    %176 = tpu.matmul %175, %8, %cst_33 {dimension_numbers = #tpu.dot_dimension_numbers<[1], [0], [0], [1], [0, 0, 1, 1], [], []>} : vector<2x32xbf16>, vector<32x16xbf16>, vector<2x16xf32> -> vector<2x16xf32>
    %177 = arith.truncf %162 : vector<2x32xf32> to vector<2x32xbf16>
    %cst_34 = arith.constant dense<0.000000e+00> : vector<2x16xf32>
    %178 = tpu.matmul %177, %8, %cst_34 {dimension_numbers = #tpu.dot_dimension_numbers<[1], [0], [0], [1], [0, 0, 1, 1], [], []>} : vector<2x32xbf16>, vector<32x16xbf16>, vector<2x16xf32> -> vector<2x16xf32>
    %c0_35 = arith.constant 0 : index
    %c0_36 = arith.constant 0 : index
    %179 = vector.load %arg5[%c0_35, %c0_36] : memref<11x8xf32, #tpu.memory_space<vmem>>, vector<11x8xf32>
    %180 = vector.extract_strided_slice %179 {offsets = [0, 0], sizes = [8, 8], strides = [1, 1]} : vector<11x8xf32> to vector<8x8xf32>
    %181 = vector.extract_strided_slice %179 {offsets = [8, 0], sizes = [1, 8], strides = [1, 1]} : vector<11x8xf32> to vector<1x8xf32>
    %182 = vector.extract_strided_slice %179 {offsets = [9, 0], sizes = [1, 8], strides = [1, 1]} : vector<11x8xf32> to vector<1x8xf32>
    %183 = vector.extract_strided_slice %179 {offsets = [10, 0], sizes = [1, 8], strides = [1, 1]} : vector<11x8xf32> to vector<1x8xf32>
    %c0_37 = arith.constant 0 : index
    %c0_38 = arith.constant 0 : index
    %184 = vector.load %arg6[%c0_37, %c0_38] : memref<2x8xi32, #tpu.memory_space<vmem>>, vector<2x8xi32>
    %c0_i32 = arith.constant 0 : i32
    %185 = vector.broadcast %c0_i32 : i32 to vector<2x8xi32>
    %186 = arith.cmpi ne, %184, %185 : vector<2x8xi32>
    %187 = vector.shape_cast %180 : vector<8x8xf32> to vector<1x8x8xf32>
    %188 = tpu.iota {dimensions = array<i32: 2>} : vector<2x8x8xi32>
    %189 = vector.extract_strided_slice %164 {offsets = [0, 0], sizes = [2, 8], strides = [1, 1]} : vector<2x16xf32> to vector<2x8xf32>
    %190 = vector.extract_strided_slice %178 {offsets = [0, 8], sizes = [2, 8], strides = [1, 1]} : vector<2x16xf32> to vector<2x8xf32>
    %191 = arith.addf %189, %190 : vector<2x8xf32>
    %192 = vector.broadcast %183 : vector<1x8xf32> to vector<2x8xf32>
    %193 = arith.addf %191, %192 : vector<2x8xf32>
    %194 = vector.broadcast %181 : vector<1x8xf32> to vector<2x8xf32>
    %195 = arith.addf %194, %193 : vector<2x8xf32>
    %196 = vector.shape_cast %195 : vector<2x8xf32> to vector<2x1x8xf32>
    %197 = vector.broadcast %196 : vector<2x1x8xf32> to vector<2x8x8xf32>
    %198 = vector.broadcast %187 : vector<1x8x8xf32> to vector<2x8x8xf32>
    %199 = arith.addf %197, %198 : vector<2x8x8xf32>
    %cst_39 = arith.constant dense<0xFF800000> : vector<2x8xf32>
    %200 = vector.multi_reduction <maximumf>, %199, %cst_39 [2] : vector<2x8x8xf32> to vector<2x8xf32>
    %201 = vector.shape_cast %200 : vector<2x8xf32> to vector<2x8x1xf32>
    %202 = vector.broadcast %201 : vector<2x8x1xf32> to vector<2x8x8xf32>
    %203 = arith.cmpf oeq, %199, %202 : vector<2x8x8xf32>
    %c8_i32 = arith.constant 8 : i32
    %204 = vector.broadcast %c8_i32 : i32 to vector<2x8x8xi32>
    %205 = arith.select %203, %188, %204 : vector<2x8x8xi1>, vector<2x8x8xi32>
    %cst_40 = arith.constant dense<2147483647> : vector<2x8xi32>
    %206 = vector.multi_reduction <minsi>, %205, %cst_40 [2] : vector<2x8x8xi32> to vector<2x8xi32>
    %207 = vector.extract_strided_slice %166 {offsets = [0, 0], sizes = [2, 8], strides = [1, 1]} : vector<2x16xf32> to vector<2x8xf32>
    %208 = vector.extract_strided_slice %176 {offsets = [0, 8], sizes = [2, 8], strides = [1, 1]} : vector<2x16xf32> to vector<2x8xf32>
    %209 = arith.addf %207, %208 : vector<2x8xf32>
    %210 = vector.broadcast %183 : vector<1x8xf32> to vector<2x8xf32>
    %211 = arith.addf %209, %210 : vector<2x8xf32>
    %212 = arith.addf %200, %211 : vector<2x8xf32>
    %213 = vector.extract_strided_slice %186 {offsets = [0, 1], sizes = [2, 1], strides = [1, 1]} : vector<2x8xi1> to vector<2x1xi1>
    %214 = vector.shape_cast %213 : vector<2x1xi1> to vector<2x1xi1>
    %215 = vector.broadcast %214 : vector<2x1xi1> to vector<2x8xi1>
    %216 = arith.select %215, %212, %195 : vector<2x8xi1>, vector<2x8xf32>
    %217 = vector.shape_cast %216 : vector<2x8xf32> to vector<2x1x8xf32>
    %218 = vector.broadcast %217 : vector<2x1x8xf32> to vector<2x8x8xf32>
    %219 = vector.broadcast %187 : vector<1x8x8xf32> to vector<2x8x8xf32>
    %220 = arith.addf %218, %219 : vector<2x8x8xf32>
    %cst_41 = arith.constant dense<0xFF800000> : vector<2x8xf32>
    %221 = vector.multi_reduction <maximumf>, %220, %cst_41 [2] : vector<2x8x8xf32> to vector<2x8xf32>
    %222 = vector.shape_cast %221 : vector<2x8xf32> to vector<2x8x1xf32>
    %223 = vector.broadcast %222 : vector<2x8x1xf32> to vector<2x8x8xf32>
    %224 = arith.cmpf oeq, %220, %223 : vector<2x8x8xf32>
    %c8_i32_42 = arith.constant 8 : i32
    %225 = vector.broadcast %c8_i32_42 : i32 to vector<2x8x8xi32>
    %226 = arith.select %224, %188, %225 : vector<2x8x8xi1>, vector<2x8x8xi32>
    %cst_43 = arith.constant dense<2147483647> : vector<2x8xi32>
    %227 = vector.multi_reduction <minsi>, %226, %cst_43 [2] : vector<2x8x8xi32> to vector<2x8xi32>
    %228 = vector.extract_strided_slice %168 {offsets = [0, 0], sizes = [2, 8], strides = [1, 1]} : vector<2x16xf32> to vector<2x8xf32>
    %229 = vector.extract_strided_slice %174 {offsets = [0, 8], sizes = [2, 8], strides = [1, 1]} : vector<2x16xf32> to vector<2x8xf32>
    %230 = arith.addf %228, %229 : vector<2x8xf32>
    %231 = vector.broadcast %183 : vector<1x8xf32> to vector<2x8xf32>
    %232 = arith.addf %230, %231 : vector<2x8xf32>
    %233 = arith.addf %221, %232 : vector<2x8xf32>
    %234 = vector.extract_strided_slice %186 {offsets = [0, 2], sizes = [2, 1], strides = [1, 1]} : vector<2x8xi1> to vector<2x1xi1>
    %235 = vector.shape_cast %234 : vector<2x1xi1> to vector<2x1xi1>
    %236 = vector.broadcast %235 : vector<2x1xi1> to vector<2x8xi1>
    %237 = arith.select %236, %233, %216 : vector<2x8xi1>, vector<2x8xf32>
    %238 = vector.shape_cast %237 : vector<2x8xf32> to vector<2x1x8xf32>
    %239 = vector.broadcast %238 : vector<2x1x8xf32> to vector<2x8x8xf32>
    %240 = vector.broadcast %187 : vector<1x8x8xf32> to vector<2x8x8xf32>
    %241 = arith.addf %239, %240 : vector<2x8x8xf32>
    %cst_44 = arith.constant dense<0xFF800000> : vector<2x8xf32>
    %242 = vector.multi_reduction <maximumf>, %241, %cst_44 [2] : vector<2x8x8xf32> to vector<2x8xf32>
    %243 = vector.shape_cast %242 : vector<2x8xf32> to vector<2x8x1xf32>
    %244 = vector.broadcast %243 : vector<2x8x1xf32> to vector<2x8x8xf32>
    %245 = arith.cmpf oeq, %241, %244 : vector<2x8x8xf32>
    %c8_i32_45 = arith.constant 8 : i32
    %246 = vector.broadcast %c8_i32_45 : i32 to vector<2x8x8xi32>
    %247 = arith.select %245, %188, %246 : vector<2x8x8xi1>, vector<2x8x8xi32>
    %cst_46 = arith.constant dense<2147483647> : vector<2x8xi32>
    %248 = vector.multi_reduction <minsi>, %247, %cst_46 [2] : vector<2x8x8xi32> to vector<2x8xi32>
    %249 = vector.extract_strided_slice %170 {offsets = [0, 0], sizes = [2, 8], strides = [1, 1]} : vector<2x16xf32> to vector<2x8xf32>
    %250 = vector.extract_strided_slice %172 {offsets = [0, 8], sizes = [2, 8], strides = [1, 1]} : vector<2x16xf32> to vector<2x8xf32>
    %251 = arith.addf %249, %250 : vector<2x8xf32>
    %252 = vector.broadcast %183 : vector<1x8xf32> to vector<2x8xf32>
    %253 = arith.addf %251, %252 : vector<2x8xf32>
    %254 = arith.addf %242, %253 : vector<2x8xf32>
    %255 = vector.extract_strided_slice %186 {offsets = [0, 3], sizes = [2, 1], strides = [1, 1]} : vector<2x8xi1> to vector<2x1xi1>
    %256 = vector.shape_cast %255 : vector<2x1xi1> to vector<2x1xi1>
    %257 = vector.broadcast %256 : vector<2x1xi1> to vector<2x8xi1>
    %258 = arith.select %257, %254, %237 : vector<2x8xi1>, vector<2x8xf32>
    %259 = vector.shape_cast %258 : vector<2x8xf32> to vector<2x1x8xf32>
    %260 = vector.broadcast %259 : vector<2x1x8xf32> to vector<2x8x8xf32>
    %261 = vector.broadcast %187 : vector<1x8x8xf32> to vector<2x8x8xf32>
    %262 = arith.addf %260, %261 : vector<2x8x8xf32>
    %cst_47 = arith.constant dense<0xFF800000> : vector<2x8xf32>
    %263 = vector.multi_reduction <maximumf>, %262, %cst_47 [2] : vector<2x8x8xf32> to vector<2x8xf32>
    %264 = vector.shape_cast %263 : vector<2x8xf32> to vector<2x8x1xf32>
    %265 = vector.broadcast %264 : vector<2x8x1xf32> to vector<2x8x8xf32>
    %266 = arith.cmpf oeq, %262, %265 : vector<2x8x8xf32>
    %c8_i32_48 = arith.constant 8 : i32
    %267 = vector.broadcast %c8_i32_48 : i32 to vector<2x8x8xi32>
    %268 = arith.select %266, %188, %267 : vector<2x8x8xi1>, vector<2x8x8xi32>
    %cst_49 = arith.constant dense<2147483647> : vector<2x8xi32>
    %269 = vector.multi_reduction <minsi>, %268, %cst_49 [2] : vector<2x8x8xi32> to vector<2x8xi32>
    %270 = vector.extract_strided_slice %172 {offsets = [0, 0], sizes = [2, 8], strides = [1, 1]} : vector<2x16xf32> to vector<2x8xf32>
    %271 = vector.extract_strided_slice %170 {offsets = [0, 8], sizes = [2, 8], strides = [1, 1]} : vector<2x16xf32> to vector<2x8xf32>
    %272 = arith.addf %270, %271 : vector<2x8xf32>
    %273 = vector.broadcast %183 : vector<1x8xf32> to vector<2x8xf32>
    %274 = arith.addf %272, %273 : vector<2x8xf32>
    %275 = arith.addf %263, %274 : vector<2x8xf32>
    %276 = vector.extract_strided_slice %186 {offsets = [0, 4], sizes = [2, 1], strides = [1, 1]} : vector<2x8xi1> to vector<2x1xi1>
    %277 = vector.shape_cast %276 : vector<2x1xi1> to vector<2x1xi1>
    %278 = vector.broadcast %277 : vector<2x1xi1> to vector<2x8xi1>
    %279 = arith.select %278, %275, %258 : vector<2x8xi1>, vector<2x8xf32>
    %280 = vector.shape_cast %279 : vector<2x8xf32> to vector<2x1x8xf32>
    %281 = vector.broadcast %280 : vector<2x1x8xf32> to vector<2x8x8xf32>
    %282 = vector.broadcast %187 : vector<1x8x8xf32> to vector<2x8x8xf32>
    %283 = arith.addf %281, %282 : vector<2x8x8xf32>
    %cst_50 = arith.constant dense<0xFF800000> : vector<2x8xf32>
    %284 = vector.multi_reduction <maximumf>, %283, %cst_50 [2] : vector<2x8x8xf32> to vector<2x8xf32>
    %285 = vector.shape_cast %284 : vector<2x8xf32> to vector<2x8x1xf32>
    %286 = vector.broadcast %285 : vector<2x8x1xf32> to vector<2x8x8xf32>
    %287 = arith.cmpf oeq, %283, %286 : vector<2x8x8xf32>
    %c8_i32_51 = arith.constant 8 : i32
    %288 = vector.broadcast %c8_i32_51 : i32 to vector<2x8x8xi32>
    %289 = arith.select %287, %188, %288 : vector<2x8x8xi1>, vector<2x8x8xi32>
    %cst_52 = arith.constant dense<2147483647> : vector<2x8xi32>
    %290 = vector.multi_reduction <minsi>, %289, %cst_52 [2] : vector<2x8x8xi32> to vector<2x8xi32>
    %291 = vector.extract_strided_slice %174 {offsets = [0, 0], sizes = [2, 8], strides = [1, 1]} : vector<2x16xf32> to vector<2x8xf32>
    %292 = vector.extract_strided_slice %168 {offsets = [0, 8], sizes = [2, 8], strides = [1, 1]} : vector<2x16xf32> to vector<2x8xf32>
    %293 = arith.addf %291, %292 : vector<2x8xf32>
    %294 = vector.broadcast %183 : vector<1x8xf32> to vector<2x8xf32>
    %295 = arith.addf %293, %294 : vector<2x8xf32>
    %296 = arith.addf %284, %295 : vector<2x8xf32>
    %297 = vector.extract_strided_slice %186 {offsets = [0, 5], sizes = [2, 1], strides = [1, 1]} : vector<2x8xi1> to vector<2x1xi1>
    %298 = vector.shape_cast %297 : vector<2x1xi1> to vector<2x1xi1>
    %299 = vector.broadcast %298 : vector<2x1xi1> to vector<2x8xi1>
    %300 = arith.select %299, %296, %279 : vector<2x8xi1>, vector<2x8xf32>
    %301 = vector.shape_cast %300 : vector<2x8xf32> to vector<2x1x8xf32>
    %302 = vector.broadcast %301 : vector<2x1x8xf32> to vector<2x8x8xf32>
    %303 = vector.broadcast %187 : vector<1x8x8xf32> to vector<2x8x8xf32>
    %304 = arith.addf %302, %303 : vector<2x8x8xf32>
    %cst_53 = arith.constant dense<0xFF800000> : vector<2x8xf32>
    %305 = vector.multi_reduction <maximumf>, %304, %cst_53 [2] : vector<2x8x8xf32> to vector<2x8xf32>
    %306 = vector.shape_cast %305 : vector<2x8xf32> to vector<2x8x1xf32>
    %307 = vector.broadcast %306 : vector<2x8x1xf32> to vector<2x8x8xf32>
    %308 = arith.cmpf oeq, %304, %307 : vector<2x8x8xf32>
    %c8_i32_54 = arith.constant 8 : i32
    %309 = vector.broadcast %c8_i32_54 : i32 to vector<2x8x8xi32>
    %310 = arith.select %308, %188, %309 : vector<2x8x8xi1>, vector<2x8x8xi32>
    %cst_55 = arith.constant dense<2147483647> : vector<2x8xi32>
    %311 = vector.multi_reduction <minsi>, %310, %cst_55 [2] : vector<2x8x8xi32> to vector<2x8xi32>
    %312 = vector.extract_strided_slice %176 {offsets = [0, 0], sizes = [2, 8], strides = [1, 1]} : vector<2x16xf32> to vector<2x8xf32>
    %313 = vector.extract_strided_slice %166 {offsets = [0, 8], sizes = [2, 8], strides = [1, 1]} : vector<2x16xf32> to vector<2x8xf32>
    %314 = arith.addf %312, %313 : vector<2x8xf32>
    %315 = vector.broadcast %183 : vector<1x8xf32> to vector<2x8xf32>
    %316 = arith.addf %314, %315 : vector<2x8xf32>
    %317 = arith.addf %305, %316 : vector<2x8xf32>
    %318 = vector.extract_strided_slice %186 {offsets = [0, 6], sizes = [2, 1], strides = [1, 1]} : vector<2x8xi1> to vector<2x1xi1>
    %319 = vector.shape_cast %318 : vector<2x1xi1> to vector<2x1xi1>
    %320 = vector.broadcast %319 : vector<2x1xi1> to vector<2x8xi1>
    %321 = arith.select %320, %317, %300 : vector<2x8xi1>, vector<2x8xf32>
    %322 = vector.shape_cast %321 : vector<2x8xf32> to vector<2x1x8xf32>
    %323 = vector.broadcast %322 : vector<2x1x8xf32> to vector<2x8x8xf32>
    %324 = vector.broadcast %187 : vector<1x8x8xf32> to vector<2x8x8xf32>
    %325 = arith.addf %323, %324 : vector<2x8x8xf32>
    %cst_56 = arith.constant dense<0xFF800000> : vector<2x8xf32>
    %326 = vector.multi_reduction <maximumf>, %325, %cst_56 [2] : vector<2x8x8xf32> to vector<2x8xf32>
    %327 = vector.shape_cast %326 : vector<2x8xf32> to vector<2x8x1xf32>
    %328 = vector.broadcast %327 : vector<2x8x1xf32> to vector<2x8x8xf32>
    %329 = arith.cmpf oeq, %325, %328 : vector<2x8x8xf32>
    %c8_i32_57 = arith.constant 8 : i32
    %330 = vector.broadcast %c8_i32_57 : i32 to vector<2x8x8xi32>
    %331 = arith.select %329, %188, %330 : vector<2x8x8xi1>, vector<2x8x8xi32>
    %cst_58 = arith.constant dense<2147483647> : vector<2x8xi32>
    %332 = vector.multi_reduction <minsi>, %331, %cst_58 [2] : vector<2x8x8xi32> to vector<2x8xi32>
    %333 = vector.extract_strided_slice %178 {offsets = [0, 0], sizes = [2, 8], strides = [1, 1]} : vector<2x16xf32> to vector<2x8xf32>
    %334 = vector.extract_strided_slice %164 {offsets = [0, 8], sizes = [2, 8], strides = [1, 1]} : vector<2x16xf32> to vector<2x8xf32>
    %335 = arith.addf %333, %334 : vector<2x8xf32>
    %336 = vector.broadcast %183 : vector<1x8xf32> to vector<2x8xf32>
    %337 = arith.addf %335, %336 : vector<2x8xf32>
    %338 = arith.addf %326, %337 : vector<2x8xf32>
    %339 = vector.extract_strided_slice %186 {offsets = [0, 7], sizes = [2, 1], strides = [1, 1]} : vector<2x8xi1> to vector<2x1xi1>
    %340 = vector.shape_cast %339 : vector<2x1xi1> to vector<2x1xi1>
    %341 = vector.broadcast %340 : vector<2x1xi1> to vector<2x8xi1>
    %342 = arith.select %341, %338, %321 : vector<2x8xi1>, vector<2x8xf32>
    %343 = vector.broadcast %182 : vector<1x8xf32> to vector<2x8xf32>
    %344 = arith.addf %342, %343 : vector<2x8xf32>
    %c0_59 = arith.constant 0 : index
    %c0_60 = arith.constant 0 : index
    %345 = vector.load %arg7[%c0_59, %c0_60] : memref<2x8xf32, #tpu.memory_space<vmem>>, vector<2x8xf32>
    tpu.vector_store %arg7[%c0_59, %c0_60], %344 {strides = array<i32>} : memref<2x8xf32, #tpu.memory_space<vmem>>, vector<2x8xf32>,
    %346 = vector.shape_cast %206 : vector<2x8xi32> to vector<1x2x8xi32>
    %347 = vector.shape_cast %227 : vector<2x8xi32> to vector<1x2x8xi32>
    %348 = vector.shape_cast %248 : vector<2x8xi32> to vector<1x2x8xi32>
    %349 = vector.shape_cast %269 : vector<2x8xi32> to vector<1x2x8xi32>
    %350 = vector.shape_cast %290 : vector<2x8xi32> to vector<1x2x8xi32>
    %351 = vector.shape_cast %311 : vector<2x8xi32> to vector<1x2x8xi32>
    %352 = vector.shape_cast %332 : vector<2x8xi32> to vector<1x2x8xi32>
    %353 = tpu.concatenate %346, %347, %348, %349, %350, %351, %352 in 0 : vector<1x2x8xi32>, vector<1x2x8xi32>, vector<1x2x8xi32>, vector<1x2x8xi32>, vector<1x2x8xi32>, vector<1x2x8xi32>, vector<1x2x8xi32> -> vector<7x2x8xi32>
    %c0_61 = arith.constant 0 : index
    %c0_62 = arith.constant 0 : index
    %c0_63 = arith.constant 0 : index
    %354 = vector.load %arg8[%c0_61, %c0_62, %c0_63] : memref<7x2x8xi32, #tpu.memory_space<vmem>>, vector<7x2x8xi32>
    tpu.vector_store %arg8[%c0_61, %c0_62, %c0_63], %353 {strides = array<i32>} : memref<7x2x8xi32, #tpu.memory_space<vmem>>, vector<7x2x8xi32>,
    return
  }
}

</mosaic_0001>

<bundles_post_ra>
// kernel: custom-call
= control target key start
LH: loop header
LB: loop body
LE: loop exit
PB: predicated region body
PF: predicated region fallthrough
CT: control target
= control target key end

     0   :  { %s6_s0 = inlined_call_operand.vmem [shape: f32[16,4], index: 0, kind: output, shape index: {}]  }

// kernel: forward_device.1
= control target key start
LH: loop header
LB: loop body
LE: loop exit
PB: predicated region body
PF: predicated region fallthrough
CT: control target
= control target key end

     0   :  { %14 = vsyncpa [#allocation3], 0  ;;  %v2492_v1 = vmov 0.0   ;;  %vm2493_vm0 = vmmov 0   ;;  %v2494_v8 = vmov 0   ;;  %s3333_s0 = inlined_call_operand.vmem [shape: f32[16,48], index: 0, kind: input, shape index: {}]   ;;  %s3334_s1 = inlined_call_operand.vmem [shape: bf16[48,128], index: 1, kind: input, shape index: {}]   ;;  %s3335_s2 = inlined_call_operand.vmem [shape: bf16[32,128], index: 2, kind: input, shape index: {}]   ;;  %s3336_s3 = inlined_call_operand.vmem [shape: f32[1,128], index: 3, kind: input, shape index: {}]   ;;  %s3337_s4 = inlined_call_operand.vmem [shape: bf16[32,16], index: 4, kind: input, shape index: {}]   ;;  %s3338_s5 = inlined_call_operand.vmem [shape: f32[11,8], index: 5, kind: input, shape index: {}]   ;;  %s3339_s6 = inlined_call_operand.vmem [shape: s32[2,8], index: 6, kind: input, shape index: {}]   ;;  %s3340_s7 = inlined_call_operand.hbm [shape: f32[2,8], index: 7, kind: output, shape index: {0}]   ;;  %s3341_s8 = inlined_call_operand.hbm [shape: s32[7,2,8], index: 8, kind: output, shape index: {1}]  }
   0x1   :  { %v2376_v0 = vld [vmem:[%s3334_s1 + $0x10] sm:$0xff]   ;;  %2205 = vmatprep.subr.bf16.mxu0 %v2492_v1  ;;  %2215 = vmatprep.subr.bf16.mxu1 %v2492_v1  ;;  %v2562_v2 = vld [vmem:[%s3335_s2 + $0x8] sm:$0xff]   ;;  %v2574_v4 = vld [vmem:[%s3335_s2] sm:$0xff]  }
   0x2   :  { %2206 = vmatpush3.bf16.msra.mxu0 %v2376_v0  ;;  %v2378_v3 = vld [vmem:[%s3334_s1 + $0x8] sm:$0xff]   ;;  %2219 = vmatprep.mubr.msk.bf16.mxu1 %vm2493_vm0, %v2492_v1  ;;  %v2380_v5 = vld [vmem:[%s3334_s1] sm:$0xff]  }
   0x3   :  { %2216 = vmatpush3.bf16.msra.mxu1 %v2562_v2  ;;  %2207 = vmatprep.subr.bf16.mxu0 %v2492_v1  ;;  %v31_v6 = vld [vmem:[%s3333_s0] sm:$0xff]  ;;  %v32_v7 = vld [vmem:[%s3333_s0 + $0x8] sm:$0xff] }
   0x4   :  { %2217 = vmatprep.subr.bf16.mxu1 %v2492_v1  ;;  %2211 = vmatprep.mubr.msk.bf16.mxu0 %vm2493_vm0, %v2492_v1 }
   0x5   :  { %2360 = vset.pattern.permute.xlu0 %v2494_v8  ;;  %2361 = vset.pattern.permute.xlu1 %v2494_v8 }
   0x6   :  { %2208 = vmatpush3.bf16.msra.mxu0 %v2378_v3 }
   0x7   :  { %2218 = vmatpush3.bf16.msra.mxu1 %v2574_v4  ;;  %2209 = vmatprep.subr.bf16.mxu0 %v2492_v1 }
   0x8   :  { %15 = vsyncpa [#allocation5], 0  ;;  %2223 = vmatprep.subr.bf16.mxu1 %v2492_v1  ;;  %v33_v9 = vpack.c.bf16 %v32_v7, %v31_v6  ;;  %vm65_vm1 = vcmask 392192   ;;  %v2121_v11 = vld [vmem:[%s3336_s3] ss:$0 sm:$0xff]  ;;  %s2495_s2 = smov 64  }
   0x9   :  { %s2496_s3 = smov 32   ;;  %vm130_vm2 = vcmask 261120   ;;  %vm1143_vm3 = vcmask 64512   ;;  %vm1230_vm5 = vcmask 1041409   ;;  %s2506_s30 = smov [#allocation2]  }
   0xa   :  { %2220 = vmatmul.mubr.bf16.vlgmr.msra.gmra.mxu1 %v2494_v8  ;;  %2210 = vmatpush3.bf16.msra.mxu0 %v2380_v5  ;;  %s2097_s9 = sshll.u32 %s2506_s30, 4  ;;  %s2098_s9 = int_to_ptr.vmem [resolvable:$true] %s2097_s9 }
   0xb   :  { %2224 = vmatpush3.bf16.msra.mxu1 %v2562_v2  ;;  %2227 = vmatprep.mubr.msk.bf16.mxu1 %vm2493_vm0, %v2492_v1  ;;  %s2448_s10 = scalar_lea.vmem %s2098_s9, 32  ;;  %p2453_p1 = scmp.lt.s32.totalorder %s2098_s9, %s2098_s9 }
   0xc   :  { %2225 = vmatprep.subr.bf16.mxu1 %v2492_v1  ;;  %2231 = vmatprep.subr.bf16.mxu0 %v2492_v1  ;;  %p2449_p0 = scmp.ne.s32.totalorder %s2098_s9, %s2448_s10  ;;  %p2454_p2 = scmp.lt.s32.totalorder %s2448_s10, %s2448_s10 }
   0xd   :  { %2212 = vmatmul.mubr.msk.bf16.vlgmr.msra.gmra.mxu0 %vm65_vm1, %v33_v9 }
   0xe   :  { %2232 = vmatpush3.bf16.msra.mxu0 %v2562_v2  ;;  %2235 = vmatprep.mubr.msk.bf16.mxu0 %vm2493_vm0, %v2492_v1  ;;  %p2455_p3 = por %p2454_p2, %p2453_p1 }
   0xf   :  { %2226 = vmatpush3.bf16.msra.mxu1 %v2574_v4  ;;  %2233 = vmatprep.subr.bf16.mxu0 %v2492_v1 }
  0x10   :  { %2239 = vmatprep.subr.bf16.mxu1 %v2492_v1  ;;  %p2456_p4 = pnand %p2455_p3, %p2449_p0 }
  0x12   :  { %2234 = vmatpush3.bf16.msra.mxu0 %v2574_v4 }
  0x13   :  { %2247 = vmatprep.subr.bf16.mxu0 %v2492_v1 }
  0xca   :  { %v168_v10 = vpop.f32.mrf.mxu1 }
  0xcc   :  { %v2221_v12 = vpop.f32.mrf.mxu1 }
  0xcd   :  { %v103_v13 = vpop.f32.mrf.mxu0 }
  0xce   :  { %v2610_v14 = vadd.f32 %v2121_v11, %v103_v13  ;;  %v171_v15 = vpop.f32.mrf.mxu1 }
  0xcf   :  { %v2213_v16 = vpop.f32.mrf.mxu0 }
  0xd0   :  { %v174_v17 = vadd.f32 %v168_v10, %v2610_v14  ;;  %v2222_v18 = vpop.f32.mrf.mxu1 }
  0xd1   :  { %v106_v19 = vpop.f32.mrf.mxu0 }
  0xd2   :  { %2383 = vtanh.f32 %v174_v17  ;;  %v2613_v20 = vadd.f32 %v2121_v11, %v106_v19  ;;  %v2128_v23 = vmul.f32 -1.442695, %v174_v17 }
  0xd3   :  { %v2214_v21 = vpop.f32.mrf.mxu0 }
  0xd4   :  { %2385 = vpow2.f32 %v2128_v23 }
  0xdf   :  { %v2384_v22 = vpop.eup %2383 }
  0xe0   :  { %184 = vrot.lane.b32.xlu0 %v2384_v22, %s2495_s2 }
  0xe1   :  { %v2386_v24 = vpop.eup %2385 }
  0xe2   :  { %v178_v25 = vadd.f32 1.0, %v2386_v24 }
  0xe4   :  { %2387 = vrcp.f32 %v178_v25 }
  0xf1   :  { %v2388_v26 = vpop.eup %2387 }
  0xf2   :  { %v182_v29 = vmul.f32 0.0, %v2388_v26 }
 0x152   :  { %v185_v27 = vpop.permute.xlu0 %184 }
 0x153   :  { %v187_v28 = vmul.f32 %v2388_v26, %v185_v27 }
 0x155   :  { %189 = vrot.lane.b32.xlu0 %v187_v28, %s2496_s3 }
 0x1c7   :  { %v190_v30 = vpop.permute.xlu0 %189 }
 0x1c8   :  { %v192_v31 = vadd.f32 %v190_v30, %v182_v29 }
 0x1ca   :  { %2389 = vtanh.f32 %v192_v31  ;;  %v258_v50 = vrot.slane %v192_v31, 6 }
 0x1d7   :  { %v2390_v32 = vpop.eup %2389 }
 0x1d8   :  { %195 = vrot.lane.b32.xlu1 %v2390_v32, %s2495_s2 }
 0x24a   :  { %v196_v33 = vpop.permute.xlu1 %195 }
 0x24b   :  { %v198_v34 = vmul.f32 %v2388_v26, %v196_v33 }
 0x24d   :  { %v199_v35 = vpack.c.bf16 %v198_v34, %v198_v34 }
 0x24f   :  { %201 = vrot.lane.b32.xlu1 %v199_v35, %s2496_s3 }
 0x2c1   :  { %v2619_v36 = vpop.permute.xlu1 %201 }
 0x2c2   :  { %2228 = vmatmul.mubr.msk.bf16.vlgmr.msra.gmra.mxu1 %vm130_vm2, %v2619_v36 }
 0x2c3   :  { %2240 = vmatpush3.bf16.msra.mxu1 %v2562_v2  ;;  %2243 = vmatprep.mubr.msk.bf16.mxu1 %vm2493_vm0, %v2492_v1 }
 0x2c4   :  { %2241 = vmatprep.subr.bf16.mxu1 %v2492_v1 }
 0x2c7   :  { %2242 = vmatpush3.bf16.msra.mxu1 %v2574_v4 }
 0x2c8   :  { %2255 = vmatprep.subr.bf16.mxu1 %v2492_v1 }
 0x382   :  { %v240_v37 = vpop.f32.mrf.mxu1 }
 0x383   :  { %v247_v38 = vrot.slane %v240_v37, 6 }
 0x384   :  { %v2229_v39 = vpop.f32.mrf.mxu1 }
 0x385   :  { %v249_v40 = vadd.f32 %v247_v38, %v2610_v14 }
 0x386   :  { %v243_v41 = vpop.f32.mrf.mxu1 }
 0x387   :  { %2391 = vtanh.f32 %v249_v40  ;;  %v2130_v44 = vmul.f32 -1.442695, %v249_v40 }
 0x388   :  { %v2230_v42 = vpop.f32.mrf.mxu1 }
 0x389   :  { %2393 = vpow2.f32 %v2130_v44 }
 0x394   :  { %v2392_v43 = vpop.eup %2391 }
 0x395   :  { %262 = vrot.lane.b32.xlu0 %v2392_v43, %s2495_s2 }
 0x396   :  { %v2394_v45 = vpop.eup %2393 }
 0x397   :  { %v253_v46 = vadd.f32 1.0, %v2394_v45 }
 0x399   :  { %2395 = vrcp.f32 %v253_v46 }
 0x3a6   :  { %v2396_v47 = vpop.eup %2395 }
 0x3a7   :  { %v260_v51 = vmul.f32 %v2396_v47, %v258_v50 }
 0x407   :  { %v263_v48 = vpop.permute.xlu0 %262 }
 0x408   :  { %v265_v49 = vmul.f32 %v2396_v47, %v263_v48 }
 0x40a   :  { %267 = vrot.lane.b32.xlu1 %v265_v49, %s2496_s3 }
 0x47c   :  { %v268_v52 = vpop.permute.xlu1 %267 }
 0x47d   :  { %v270_v53 = vadd.f32 %v268_v52, %v260_v51 }
 0x47f   :  { %2397 = vtanh.f32 %v270_v53  ;;  %v337_v13 = vrot.slane %v270_v53, 6 }
 0x48c   :  { %v2398_v54 = vpop.eup %2397 }
 0x48d   :  { %273 = vrot.lane.b32.xlu0 %v2398_v54, %s2495_s2 }
 0x4ff   :  { %v274_v55 = vpop.permute.xlu0 %273 }
 0x500   :  { %v276_v56 = vmul.f32 %v2396_v47, %v274_v55 }
 0x502   :  { %v277_v57 = vpack.c.bf16 %v276_v56, %v276_v56 }
 0x504   :  { %v279_v58 = vrot.slane %v277_v57, 1 }
 0x506   :  { %280 = vrot.lane.b32.xlu1 %v279_v58, %s2496_s3 }
 0x578   :  { %v2634_v59 = vpop.permute.xlu1 %280 }
 0x579   :  { %2236 = vmatmul.mubr.msk.bf16.vlgmr.msra.gmra.mxu0 %vm130_vm2, %v2634_v59 }
 0x57a   :  { %2248 = vmatpush3.bf16.msra.mxu0 %v2562_v2  ;;  %2251 = vmatprep.mubr.msk.bf16.mxu0 %vm2493_vm0, %v2492_v1 }
 0x57b   :  { %2249 = vmatprep.subr.bf16.mxu0 %v2492_v1 }
 0x57e   :  { %2250 = vmatpush3.bf16.msra.mxu0 %v2574_v4 }
 0x57f   :  { %2263 = vmatprep.subr.bf16.mxu0 %v2492_v1 }
 0x639   :  { %v319_v60 = vpop.f32.mrf.mxu0 }
 0x63a   :  { %v326_v61 = vrot.slane %v319_v60, 4 }
 0x63b   :  { %v2237_v62 = vpop.f32.mrf.mxu0 }
 0x63c   :  { %v328_v63 = vadd.f32 %v326_v61, %v2610_v14 }
 0x63d   :  { %v322_v0 = vpop.f32.mrf.mxu0 }
 0x63e   :  { %2399 = vtanh.f32 %v328_v63  ;;  %v2132_v6 = vmul.f32 -1.442695, %v328_v63 }
 0x63f   :  { %v2238_v3 = vpop.f32.mrf.mxu0 }
 0x640   :  { %2401 = vpow2.f32 %v2132_v6 }
 0x64b   :  { %v2400_v5 = vpop.eup %2399 }
 0x64c   :  { %341 = vrot.lane.b32.xlu0 %v2400_v5, %s2495_s2 }
 0x64d   :  { %v2402_v7 = vpop.eup %2401 }
 0x64e   :  { %v332_v9 = vadd.f32 1.0, %v2402_v7 }
 0x650   :  { %2403 = vrcp.f32 %v332_v9 }
 0x65d   :  { %v2404_v10 = vpop.eup %2403 }
 0x65e   :  { %v339_v15 = vmul.f32 %v2404_v10, %v337_v13 }
 0x6be   :  { %v342_v11 = vpop.permute.xlu0 %341 }
 0x6bf   :  { %v344_v12 = vmul.f32 %v2404_v10, %v342_v11 }
 0x6c1   :  { %346 = vrot.lane.b32.xlu1 %v344_v12, %s2496_s3 }
 0x733   :  { %v347_v16 = vpop.permute.xlu1 %346 }
 0x734   :  { %v349_v17 = vadd.f32 %v347_v16, %v339_v15 }
 0x736   :  { %2405 = vtanh.f32 %v349_v17  ;;  %v416_v39 = vrot.slane %v349_v17, 6 }
 0x743   :  { %v2406_v18 = vpop.eup %2405 }
 0x744   :  { %352 = vrot.lane.b32.xlu0 %v2406_v18, %s2495_s2 }
 0x7b6   :  { %v353_v19 = vpop.permute.xlu0 %352 }
 0x7b7   :  { %v355_v21 = vmul.f32 %v2404_v10, %v353_v19 }
 0x7b9   :  { %v356_v22 = vpack.c.bf16 %v355_v21, %v355_v21 }
 0x7bb   :  { %v358_v23 = vrot.slane %v356_v22, 2 }
 0x7bd   :  { %359 = vrot.lane.b32.xlu1 %v358_v23, %s2496_s3 }
 0x82f   :  { %v2649_v24 = vpop.permute.xlu1 %359 }
 0x830   :  { %2244 = vmatmul.mubr.msk.bf16.vlgmr.msra.gmra.mxu1 %vm130_vm2, %v2649_v24 }
 0x831   :  { %2256 = vmatpush3.bf16.msra.mxu1 %v2562_v2  ;;  %2259 = vmatprep.mubr.msk.bf16.mxu1 %vm2493_vm0, %v2492_v1 }
 0x832   :  { %2257 = vmatprep.subr.bf16.mxu1 %v2492_v1 }
 0x835   :  { %2258 = vmatpush3.bf16.msra.mxu1 %v2574_v4 }
 0x836   :  { %2271 = vmatprep.subr.bf16.mxu1 %v2492_v1 }
 0x8f0   :  { %v398_v25 = vpop.f32.mrf.mxu1 }
 0x8f1   :  { %v405_v26 = vrot.slane %v398_v25, 2 }
 0x8f2   :  { %v2245_v27 = vpop.f32.mrf.mxu1 }
 0x8f3   :  { %v407_v28 = vadd.f32 %v405_v26, %v2610_v14 }
 0x8f4   :  { %v401_v29 = vpop.f32.mrf.mxu1 }
 0x8f5   :  { %2407 = vtanh.f32 %v407_v28  ;;  %v2134_v32 = vmul.f32 -1.442695, %v407_v28 }
 0x8f6   :  { %v2246_v30 = vpop.f32.mrf.mxu1 }
 0x8f7   :  { %2409 = vpow2.f32 %v2134_v32 }
 0x902   :  { %v2408_v31 = vpop.eup %2407 }
 0x903   :  { %420 = vrot.lane.b32.xlu0 %v2408_v31, %s2495_s2 }
 0x904   :  { %v2410_v33 = vpop.eup %2409 }
 0x905   :  { %v411_v34 = vadd.f32 1.0, %v2410_v33  ;;  %v2697_v33 = vld [vmem:[%s3337_s4 + $0x8] sm:$0xff]  }
 0x907   :  { %2411 = vrcp.f32 %v411_v34 }
 0x914   :  { %v2412_v35 = vpop.eup %2411 }
 0x915   :  { %v418_v40 = vmul.f32 %v2412_v35, %v416_v39 }
 0x975   :  { %v421_v37 = vpop.permute.xlu0 %420 }
 0x976   :  { %v423_v38 = vmul.f32 %v2412_v35, %v421_v37 }
 0x978   :  { %425 = vrot.lane.b32.xlu1 %v423_v38, %s2496_s3 }
 0x9ea   :  { %v426_v41 = vpop.permute.xlu1 %425 }
 0x9eb   :  { %v428_v14 = vadd.f32 %v426_v41, %v418_v40 }
 0x9ed   :  { %2413 = vtanh.f32 %v428_v14  ;;  %v492_v61 = vrot.slane %v428_v14, 6 }
 0x9fa   :  { %v2414_v42 = vpop.eup %2413 }
 0x9fb   :  { %431 = vrot.lane.b32.xlu0 %v2414_v42, %s2495_s2 }
 0xa6d   :  { %v432_v43 = vpop.permute.xlu0 %431 }
 0xa6e   :  { %v434_v44 = vmul.f32 %v2412_v35, %v432_v43  ;;  %v2707_v35 = vld [vmem:[%s3337_s4] sm:$0xff]   ;;  %s2497_s4 = smov 120  }
 0xa70   :  { %v435_v45 = vpack.c.bf16 %v434_v44, %v434_v44 }
 0xa72   :  { %v437_v46 = vrot.slane %v435_v45, 3 }
 0xa74   :  { %438 = vrot.lane.b32.xlu1 %v437_v46, %s2496_s3 }
 0xae6   :  { %v2664_v47 = vpop.permute.xlu1 %438 }
 0xae7   :  { %2252 = vmatmul.mubr.msk.bf16.vlgmr.msra.gmra.mxu0 %vm130_vm2, %v2664_v47 }
 0xae8   :  { %2264 = vmatpush3.bf16.msra.mxu0 %v2562_v2  ;;  %2267 = vmatprep.mubr.msk.bf16.mxu0 %vm2493_vm0, %v2492_v1 }
 0xae9   :  { %2265 = vmatprep.subr.bf16.mxu0 %v2492_v1 }
 0xaec   :  { %2266 = vmatpush3.bf16.msra.mxu0 %v2574_v4 }
 0xaed   :  { %2279 = vmatprep.subr.bf16.mxu0 %v2492_v1 }
 0xba7   :  { %v477_v48 = vpop.f32.mrf.mxu0 }
 0xba8   :  { %v483_v49 = vadd.f32 %v477_v48, %v2613_v20 }
 0xba9   :  { %v2253_v50 = vpop.f32.mrf.mxu0 }
 0xbaa   :  { %2415 = vtanh.f32 %v483_v49  ;;  %v2136_v54 = vmul.f32 -1.442695, %v483_v49 }
 0xbab   :  { %v480_v51 = vpop.f32.mrf.mxu0 }
 0xbac   :  { %2417 = vpow2.f32 %v2136_v54 }
 0xbad   :  { %v2254_v52 = vpop.f32.mrf.mxu0 }
 0xbb7   :  { %v2416_v53 = vpop.eup %2415 }
 0xbb8   :  { %496 = vrot.lane.b32.xlu0 %v2416_v53, %s2495_s2 }
 0xbb9   :  { %v2418_v55 = vpop.eup %2417 }
 0xbba   :  { %v487_v56 = vadd.f32 1.0, %v2418_v55 }
 0xbbc   :  { %2419 = vrcp.f32 %v487_v56 }
 0xbc9   :  { %v2420_v57 = vpop.eup %2419 }
 0xbca   :  { %v494_v62 = vmul.f32 %v2420_v57, %v492_v61 }
 0xc2a   :  { %v497_v58 = vpop.permute.xlu0 %496 }
 0xc2b   :  { %v499_v60 = vmul.f32 %v2420_v57, %v497_v58 }
 0xc2d   :  { %501 = vrot.lane.b32.xlu1 %v499_v60, %s2496_s3 }
 0xc9f   :  { %v502_v63 = vpop.permute.xlu1 %501 }
 0xca0   :  { %v504_v0 = vadd.f32 %v502_v63, %v494_v62 }
 0xca2   :  { %2421 = vtanh.f32 %v504_v0  ;;  %v570_v23 = vrot.slane %v504_v0, 6 }
 0xcaf   :  { %v2422_v3 = vpop.eup %2421 }
 0xcb0   :  { %507 = vrot.lane.b32.xlu0 %v2422_v3, %s2495_s2 }
 0xd22   :  { %v508_v5 = vpop.permute.xlu0 %507 }
 0xd23   :  { %v510_v6 = vmul.f32 %v2420_v57, %v508_v5 }
 0xd25   :  { %v511_v7 = vpack.c.bf16 %v510_v6, %v510_v6 }
 0xd27   :  { %513 = vrot.lane.b32.xlu1 %v511_v7, %s2496_s3 }
 0xd99   :  { %v514_v9 = vpop.permute.xlu1 %513 }
 0xd9a   :  { %2260 = vmatmul.mubr.msk.bf16.vlgmr.msra.gmra.mxu1 %vm130_vm2, %v514_v9 }
 0xd9b   :  { %2272 = vmatpush3.bf16.msra.mxu1 %v2562_v2  ;;  %2275 = vmatprep.mubr.msk.bf16.mxu1 %vm2493_vm0, %v2492_v1 }
 0xd9c   :  { %2273 = vmatprep.subr.bf16.mxu1 %v2492_v1 }
 0xd9f   :  { %2274 = vmatpush3.bf16.msra.mxu1 %v2574_v4 }
 0xda0   :  { %2287 = vmatprep.subr.bf16.mxu1 %v2492_v1 }
 0xe5a   :  { %v552_v10 = vpop.f32.mrf.mxu1 }
 0xe5b   :  { %v559_v11 = vrot.slane %v552_v10, 6 }
 0xe5c   :  { %v2261_v12 = vpop.f32.mrf.mxu1 }
 0xe5d   :  { %v561_v13 = vadd.f32 %v559_v11, %v2613_v20 }
 0xe5e   :  { %v555_v15 = vpop.f32.mrf.mxu1 }
 0xe5f   :  { %2423 = vtanh.f32 %v561_v13  ;;  %v2138_v2 = vmul.f32 -1.442695, %v561_v13 }
 0xe60   :  { %v2262_v16 = vpop.f32.mrf.mxu1 }
 0xe61   :  { %2425 = vpow2.f32 %v2138_v2 }
 0xe6c   :  { %v2424_v17 = vpop.eup %2423 }
 0xe6d   :  { %574 = vrot.lane.b32.xlu0 %v2424_v17, %s2495_s2 }
 0xe6e   :  { %v2426_v18 = vpop.eup %2425 }
 0xe6f   :  { %v565_v19 = vadd.f32 1.0, %v2426_v18 }
 0xe71   :  { %2427 = vrcp.f32 %v565_v19 }
 0xe7e   :  { %v2428_v21 = vpop.eup %2427 }
 0xe7f   :  { %v572_v25 = vmul.f32 %v2428_v21, %v570_v23 }
 0xedf   :  { %v575_v4 = vpop.permute.xlu0 %574 }
 0xee0   :  { %v577_v22 = vmul.f32 %v2428_v21, %v575_v4 }
 0xee2   :  { %579 = vrot.lane.b32.xlu1 %v577_v22, %s2496_s3 }
 0xf54   :  { %v580_v26 = vpop.permute.xlu1 %579 }
 0xf55   :  { %v2689_v27 = vadd.f32 %v580_v26, %v572_v25 }
 0xf57   :  { %2429 = vtanh.f32 %v2689_v27  ;;  %v649_v61 = vrot.slane %v2689_v27, 6 }
 0xf64   :  { %v2430_v28 = vpop.eup %2429 }
 0xf65   :  { %585 = vrot.lane.b32.xlu0 %v2430_v28, %s2495_s2 }
 0xfd7   :  { %v586_v29 = vpop.permute.xlu0 %585 }
 0xfd8   :  { %v588_v30 = vmul.f32 %v2428_v21, %v586_v29 }
 0xfda   :  { %v589_v31 = vpack.c.bf16 %v588_v30, %v588_v30 }
 0xfdc   :  { %v591_v32 = vrot.slane %v589_v31, 1 }
 0xfde   :  { %592 = vrot.lane.b32.xlu1 %v591_v32, %s2496_s3 }
0x1050   :  { %v2699_v34 = vpop.permute.xlu1 %592 }
0x1051   :  { %2268 = vmatmul.mubr.msk.bf16.vlgmr.msra.gmra.mxu0 %vm130_vm2, %v2699_v34 }
0x1052   :  { %2280 = vmatpush3.bf16.msra.mxu0 %v2697_v33  ;;  %2283 = vmatprep.mubr.msk.bf16.mxu0 %vm2493_vm0, %v2492_v1 }
0x1053   :  { %2281 = vmatprep.subr.bf16.mxu0 %v2492_v1 }
0x1056   :  { %2282 = vmatpush3.bf16.msra.mxu0 %v2707_v35 }
0x1057   :  { %2295 = vmatprep.subr.bf16.mxu0 %v2492_v1 }
0x1059   :  { %2284 = vmatmul.mubr.msk.bf16.vlgmr.msra.gmra.mxu0 %vm130_vm2, %v2619_v36 }
0x105a   :  { %2296 = vmatpush3.bf16.msra.mxu0 %v2697_v33  ;;  %2299 = vmatprep.mubr.msk.bf16.mxu0 %vm2493_vm0, %v2492_v1 }
0x105b   :  { %2297 = vmatprep.subr.bf16.mxu0 %v2492_v1 }
0x105e   :  { %2298 = vmatpush3.bf16.msra.mxu0 %v2707_v35 }
0x105f   :  { %2311 = vmatprep.subr.bf16.mxu0 %v2492_v1 }
0x1061   :  { %2300 = vmatmul.mubr.msk.bf16.vlgmr.msra.gmra.mxu0 %vm130_vm2, %v2649_v24 }
0x1062   :  { %2312 = vmatpush3.bf16.msra.mxu0 %v2697_v33  ;;  %2315 = vmatprep.mubr.msk.bf16.mxu0 %vm2493_vm0, %v2492_v1 }
0x1063   :  { %2313 = vmatprep.subr.bf16.mxu0 %v2492_v1 }
0x1066   :  { %2314 = vmatpush3.bf16.msra.mxu0 %v2707_v35 }
0x1067   :  { %2327 = vmatprep.subr.bf16.mxu0 %v2492_v1 }
0x1069   :  { %2316 = vmatmul.mubr.msk.bf16.vlgmr.msra.gmra.mxu0 %vm130_vm2, %v514_v9 }
0x106a   :  { %2328 = vmatpush3.bf16.msra.mxu0 %v2697_v33  ;;  %2331 = vmatprep.mubr.msk.bf16.mxu0 %vm2493_vm0, %v2492_v1 }
0x106b   :  { %2329 = vmatprep.subr.bf16.mxu0 %v2492_v1 }
0x106e   :  { %2330 = vmatpush3.bf16.msra.mxu0 %v2707_v35 }
0x1111   :  { %v631_v36 = vpop.f32.mrf.mxu0 }
0x1112   :  { %v638_v24 = vrot.slane %v631_v36, 4 }
0x1113   :  { %v2269_v37 = vpop.f32.mrf.mxu0 }
0x1114   :  { %v640_v38 = vadd.f32 %v638_v24, %v2613_v20 }
0x1115   :  { %v634_v39 = vpop.f32.mrf.mxu0 }
0x1116   :  { %2431 = vtanh.f32 %v640_v38  ;;  %v2140_v54 = vmul.f32 -1.442695, %v640_v38 }
0x1117   :  { %v2270_v40 = vpop.f32.mrf.mxu0 }
0x1118   :  { %2433 = vpow2.f32 %v2140_v54 }
0x1119   :  { %v2737_v41 = vpop.f32.mrf.mxu0 }
0x111b   :  { %v2285_v14 = vpop.f32.mrf.mxu0 }
0x111d   :  { %v796_v42 = vpop.f32.mrf.mxu0 }
0x111f   :  { %v2286_v43 = vpop.f32.mrf.mxu0 }
0x1121   :  { %v2739_v44 = vpop.f32.mrf.mxu0 }
0x1123   :  { %v2432_v45 = vpop.eup %2431  ;;  %v2301_v46 = vpop.f32.mrf.mxu0 }
0x1124   :  { %653 = vrot.lane.b32.xlu0 %v2432_v45, %s2495_s2 }
0x1125   :  { %v876_v48 = vpop.f32.mrf.mxu0  ;;  %v2434_v55 = vpop.eup %2433 }
0x1126   :  { %v644_v56 = vadd.f32 1.0, %v2434_v55  ;;  %v2498_v55 = vmov 1966171168  }
0x1127   :  { %v2302_v49 = vpop.f32.mrf.mxu0 }
0x1128   :  { %2435 = vrcp.f32 %v644_v56  ;;  %v1110_v56 = vunpack.c.l.s4 %v2498_v55 }
0x1129   :  { %v2742_v50 = vpop.f32.mrf.mxu0 }
0x112b   :  { %v2317_v51 = vpop.f32.mrf.mxu0 }
0x112d   :  { %v956_v52 = vpop.f32.mrf.mxu0 }
0x112f   :  { %v2318_v53 = vpop.f32.mrf.mxu0 }
0x1130   :  { %v1091_v53 = vlaneseq }
0x1132   :  { %v1099_v54 = vshrl.u32 %v1091_v53, 7 }
0x1135   :  { %v2436_v57 = vpop.eup %2435 }
0x1136   :  { %v651_v62 = vmul.f32 %v2436_v57, %v649_v61  ;;  %v1111_v61 = vunpack.c.0.s8 %v1110_v56 }
0x1196   :  { %v654_v58 = vpop.permute.xlu0 %653 }
0x1197   :  { %v656_v60 = vmul.f32 %v2436_v57, %v654_v58  ;;  %v1088_v58 = vld [vmem:[%s3338_s5 + $0x8] sm:$0x7] }
0x1199   :  { %658 = vrot.lane.b32.xlu1 %v656_v60, %s2496_s3  ;;  %v2806_v60 = vsub.s32 0, %v1099_v54 }
0x120b   :  { %v659_v63 = vpop.permute.xlu1 %658 }
0x120c   :  { %v2746_v0 = vadd.f32 %v659_v63, %v651_v62 }
0x120e   :  { %2437 = vtanh.f32 %v2746_v0  ;;  %v728_v24 = vrot.slane %v2746_v0, 6  ;;  %v1106_v0 = vrot.slane %v1088_v58, %v2806_v60 }
0x121b   :  { %v2438_v3 = vpop.eup %2437 }
0x121c   :  { %664 = vrot.lane.b32.xlu0 %v2438_v3, %s2495_s2 }
0x128e   :  { %v665_v5 = vpop.permute.xlu0 %664 }
0x128f   :  { %v667_v6 = vmul.f32 %v2436_v57, %v665_v5  ;;  %v1100_v57 = vsub.s32 2, %v1099_v54  ;;  %v2812_v5 = vsub.s32 %v1111_v61, %v1099_v54 }
0x1291   :  { %v668_v7 = vpack.c.bf16 %v667_v6, %v667_v6  ;;  %v2808_v63 = vrot.slane %v1088_v58, %v1100_v57 }
0x1293   :  { %v670_v9 = vrot.slane %v668_v7, 2 }
0x1295   :  { %671 = vrot.lane.b32.xlu1 %v670_v9, %s2496_s3 }
0x1307   :  { %v672_v10 = vpop.permute.xlu1 %671 }
0x1308   :  { %2276 = vmatmul.mubr.msk.bf16.vlgmr.msra.gmra.mxu1 %vm130_vm2, %v672_v10  ;;  %2332 = vmatmul.mubr.msk.bf16.vlgmr.msra.gmra.mxu0 %vm130_vm2, %v672_v10 }
0x1309   :  { %2288 = vmatpush3.bf16.msra.mxu1 %v2697_v33  ;;  %2291 = vmatprep.mubr.msk.bf16.mxu1 %vm2493_vm0, %v2492_v1 }
0x130a   :  { %2289 = vmatprep.subr.bf16.mxu1 %v2492_v1 }
0x130d   :  { %2290 = vmatpush3.bf16.msra.mxu1 %v2707_v35 }
0x130e   :  { %2303 = vmatprep.subr.bf16.mxu1 %v2492_v1 }
0x1310   :  { %2292 = vmatmul.mubr.msk.bf16.vlgmr.msra.gmra.mxu1 %vm130_vm2, %v2634_v59 }
0x1311   :  { %2304 = vmatpush3.bf16.msra.mxu1 %v2697_v33  ;;  %2307 = vmatprep.mubr.msk.bf16.mxu1 %vm2493_vm0, %v2492_v1 }
0x1312   :  { %2305 = vmatprep.subr.bf16.mxu1 %v2492_v1 }
0x1315   :  { %2306 = vmatpush3.bf16.msra.mxu1 %v2707_v35 }
0x1316   :  { %2319 = vmatprep.subr.bf16.mxu1 %v2492_v1 }
0x1318   :  { %2308 = vmatmul.mubr.msk.bf16.vlgmr.msra.gmra.mxu1 %vm130_vm2, %v2664_v47 }
0x1319   :  { %2320 = vmatpush3.bf16.msra.mxu1 %v2697_v33  ;;  %2323 = vmatprep.mubr.msk.bf16.mxu1 %vm2493_vm0, %v2492_v1 }
0x131a   :  { %2321 = vmatprep.subr.bf16.mxu1 %v2492_v1 }
0x131d   :  { %2322 = vmatpush3.bf16.msra.mxu1 %v2707_v35 }
0x131e   :  { %2335 = vmatprep.subr.bf16.mxu1 %v2492_v1 }
0x1320   :  { %2324 = vmatmul.mubr.msk.bf16.vlgmr.msra.gmra.mxu1 %vm130_vm2, %v2699_v34 }
0x1321   :  { %2336 = vmatpush3.bf16.msra.mxu1 %v2697_v33  ;;  %2339 = vmatprep.mubr.msk.bf16.mxu1 %vm2493_vm0, %v2492_v1 }
0x1322   :  { %2337 = vmatprep.subr.bf16.mxu1 %v2492_v1 }
0x1325   :  { %2338 = vmatpush3.bf16.msra.mxu1 %v2707_v35 }
0x13c8   :  { %v710_v59 = vpop.f32.mrf.mxu1  ;;  %v2782_v47 = vpop.f32.mrf.mxu0 }
0x13c9   :  { %v717_v11 = vrot.slane %v710_v59, 2 }
0x13ca   :  { %v2277_v12 = vpop.f32.mrf.mxu1  ;;  %v2333_v13 = vpop.f32.mrf.mxu0 }
0x13cb   :  { %v719_v15 = vadd.f32 %v717_v11, %v2613_v20  ;;  %v2820_v11 = vld [vmem:[%s3338_s5] sm:$0xff] }
0x13cc   :  { %v713_v16 = vpop.f32.mrf.mxu1  ;;  %v1036_v17 = vpop.f32.mrf.mxu0 }
0x13cd   :  { %2439 = vtanh.f32 %v719_v15  ;;  %v2142_v31 = vmul.f32 -1.442695, %v719_v15 }
0x13ce   :  { %v2278_v2 = vpop.f32.mrf.mxu1  ;;  %v2334_v18 = vpop.f32.mrf.mxu0 }
0x13cf   :  { %2441 = vpow2.f32 %v2142_v31  ;;  %v1089_v31 = vld [vmem:[%s3339_s6] sm:$0x3] }
0x13d0   :  { %v2785_v19 = vpop.f32.mrf.mxu1  ;;  %vm1090_vm4 = vcmp.ne.s32.totalorder %v1089_v31, 0 }
0x13d2   :  { %v2293_v21 = vpop.f32.mrf.mxu1 }
0x13d4   :  { %v836_v4 = vpop.f32.mrf.mxu1 }
0x13d6   :  { %v2294_v1 = vpop.f32.mrf.mxu1 }
0x13d8   :  { %v2787_v22 = vpop.f32.mrf.mxu1 }
0x13da   :  { %v2440_v23 = vpop.eup %2439  ;;  %v2309_v25 = vpop.f32.mrf.mxu1 }
0x13db   :  { %732 = vrot.lane.b32.xlu0 %v2440_v23, %s2495_s2  ;;  %v2837_v23 = vsub.s32 1, %v1099_v54 }
0x13dc   :  { %v916_v26 = vpop.f32.mrf.mxu1  ;;  %v2442_v32 = vpop.eup %2441 }
0x13dd   :  { %v723_v33 = vadd.f32 1.0, %v2442_v32 }
0x13de   :  { %v2310_v27 = vpop.f32.mrf.mxu1 }
0x13df   :  { %2443 = vrcp.f32 %v723_v33 }
0x13e0   :  { %v2790_v28 = vpop.f32.mrf.mxu1 }
0x13e2   :  { %v2325_v20 = vpop.f32.mrf.mxu1 }
0x13e4   :  { %v996_v29 = vpop.f32.mrf.mxu1 }
0x13e6   :  { %v2326_v30 = vpop.f32.mrf.mxu1 }
0x13ec   :  { %v2444_v34 = vpop.eup %2443 }
0x13ed   :  { %v730_v37 = vmul.f32 %v2444_v34, %v728_v24 }
0x144d   :  { %v733_v35 = vpop.permute.xlu0 %732 }
0x144e   :  { %v735_v36 = vmul.f32 %v2444_v34, %v733_v35  ;;  %v2499_v35 = vmov 1  }
0x1450   :  { %737 = vrot.lane.b32.xlu1 %v735_v36, %s2496_s3  ;;  %v2857_v36 = vand.u32 127, %v1091_v53 }
0x1452   :  { %v2860_v24 = vsub.s32 %v2857_v36, %v1099_v54 }
0x14c2   :  { %v738_v38 = vpop.permute.xlu1 %737 }
0x14c3   :  { %v740_v39 = vadd.f32 %v738_v38, %v730_v37 }
0x14c5   :  { %2445 = vtanh.f32 %v740_v39 }
0x14d2   :  { %v2446_v40 = vpop.eup %2445 }
0x14d3   :  { %743 = vrot.lane.b32.xlu0 %v2446_v40, %s2495_s2 }
0x1545   :  { %v744_v14 = vpop.permute.xlu0 %743 }
0x1546   :  { %v746_v42 = vmul.f32 %v2444_v34, %v744_v14  ;;  %v2853_v34 = vsel %vm1090_vm4, 1, %v2494_v8 }
0x1548   :  { %v1039_v43 = vpack.c.bf16 %v746_v42, %v746_v42 }
0x154a   :  { %v1041_v45 = vrot.slane %v1039_v43, 3 }
0x154c   :  { %1042 = vrot.lane.b32.xlu1 %v1041_v45, %s2496_s3 }
0x1550   :  { %1185 = vrot.lane.b32.xlu1 %v2782_v47, %s2497_s4 }
0x15be   :  { %v1043_v46 = vpop.permute.xlu1 %1042 }
0x15bf   :  { %2340 = vmatmul.mubr.msk.bf16.vlgmr.msra.gmra.mxu1 %vm130_vm2, %v1043_v46 }
0x15c2   :  { %v1186_v21 = vpop.permute.xlu1 %1185 }
0x15c3   :  { %v1188_v4 = vadd.f32 %v1186_v21, %v2785_v19 }
0x15c5   :  { %v1189_v1 = vadd.f32 %v1188_v4, %v2808_v63 }
0x15c7   :  { %v1201_v25 = vrot.slane %v1189_v1, %v2837_v23  ;;  %v1194_v26 = vrot.slane %v1189_v1, %v2806_v60 }
0x167f   :  { %v2799_v48 = vpop.f32.mrf.mxu1 }
0x1680   :  { %1094 = vrot.lane.b32.xlu0 %v2799_v48, %s2497_s4 }
0x1681   :  { %v2341_v49 = vpop.f32.mrf.mxu1 }
0x1683   :  { %v1084_v51 = vpop.f32.mrf.mxu1 }
0x1685   :  { %v2342_v52 = vpop.f32.mrf.mxu1 }
0x16f2   :  { %v1095_v62 = vpop.permute.xlu0 %1094 }
0x16f3   :  { %v1097_v3 = vadd.f32 %v1095_v62, %v2737_v41 }
0x16f5   :  { %v1102_v6 = vadd.f32 %v2808_v63, %v1097_v3 }
0x16f7   :  { %v1107_v7 = vadd.f32 %v1106_v0, %v1102_v6 }
0x16f9   :  { %v1115_v9 = vrot.slane %v1107_v7, %v2812_v5 }
0x16fb   :  { %v1123_v10 = vrot.slane %v1115_v9, %v2812_v5  ;;  %v1116_v59 = vcombine.high %v1115_v9, %v1115_v9 }
0x16fd   :  { %v1134_v12 = vrot.slane %v1123_v10, %v2806_v60  ;;  %v1130_v13 = vrot.slane %v1116_v59, %v2812_v5 }
0x16ff   :  { %v2825_v15 = vadd.f32 %v1134_v12, %v2820_v11  ;;  %v1138_v16 = vrot.slane %v1130_v13, %v2806_v60  ;;  %v2500_v13 = vmov 2  }
0x1701   :  { %v1144_v17 = vsel %vm1143_vm3, %v2825_v15, -inf  ;;  %v2831_v2 = vadd.f32 %v1138_v16, %v2820_v11 }
0x1702   :  { %1145 = vmax.xlane.f32.xlu0 %v1144_v17 }
0x1703   :  { %v1147_v18 = vsel %vm1143_vm3, %v2831_v2, -inf }
0x1704   :  { %1148 = vmax.xlane.f32.xlu1 %v1147_v18 }
0x1715   :  { %1203 = vbcast.lane.b32.xlu1 %v1201_v25, 256 }
0x1718   :  { %1196 = vbcast.lane.b32.xlu0 %v1194_v26, 256 }
0x178b   :  { %v2841_v27 = vpop.xlane.xlu0 %1145 }
0x178c   :  { %vm1150_vm11 = vcmp.eq.f32.partialorder %v2825_v15, %v2841_v27 }
0x178d   :  { %v2843_v20 = vpop.xlane.xlu1 %1148 }
0x178e   :  { %vm1151_vm14 = vcmp.eq.f32.partialorder %v2831_v2, %v2843_v20 }
0x178f   :  { %v1197_v29 = vpop.permute.xlu0 %1196 }
0x1790   :  { %v1207_v30 = vadd.f32 %v1197_v29, %v2841_v27 }
0x1791   :  { %v1204_v32 = vpop.permute.xlu1 %1203 }
0x1792   :  { %v1208_v33 = vadd.f32 %v1204_v32, %v2843_v20  ;;  %1217 = vperm.xlu0 %2360, %v1207_v30  }
0x1794   :  { %1220 = vperm.xlu1 %2361, %v1208_v33  }
0x1796   :  { %1310 = vrot.lane.b32.xlu0 %v2790_v28, %s2497_s4 }
0x1798   :  { %2362 = vset.pattern.permute.xlu1 %v2499_v35 }
0x1799   :  { %1211 = vperm.xlu1 %2362, %v2853_v34  }
0x179d   :  { %2363 = vset.pattern.permute.xlu1 %v2494_v8 }
0x180d   :  { %v1218_v38 = vpop.permute.xlu0 %1217 }
0x180e   :  { %v1225_v40 = vrot.slane %v1218_v38, %v2860_v24 }
0x180f   :  { %v1221_v37 = vpop.permute.xlu1 %1220 }
0x1810   :  { %v1229_v39 = vrot.slane %v1221_v37, %v2860_v24 }
0x1811   :  { %v1311_v58 = vpop.permute.xlu0 %1310 }
0x1812   :  { %v1231_v42 = vsel %vm1230_vm5, %v1229_v39, %v1225_v40  ;;  %v1313_v61 = vadd.f32 %v1311_v58, %v2739_v44 }
0x1814   :  { %v1212_v14 = vpop.permute.xlu1 %1211  ;;  %v1314_v62 = vadd.f32 %v1313_v61, %v2808_v63 }
0x1815   :  { %vm1213_vm6 = vcmp.eq.s32.totalorder %v1212_v14, 1 }
0x1816   :  { %v1233_v43 = vsel %vm1213_vm6, %v1231_v42, %v1107_v7  ;;  %v1326_v0 = vrot.slane %v1314_v62, %v2837_v23  ;;  %v1319_v3 = vrot.slane %v1314_v62, %v2806_v60 }
0x1817   :  { %v1241_v45 = vrot.slane %v1233_v43, %v2812_v5 }
0x1819   :  { %v1242_v46 = vcombine.high %v1241_v45, %v1241_v45  ;;  %v1249_v49 = vrot.slane %v1241_v45, %v2812_v5 }
0x181b   :  { %v1260_v51 = vrot.slane %v1249_v49, %v2806_v60  ;;  %v1256_v52 = vrot.slane %v1242_v46, %v2812_v5 }
0x181d   :  { %v2870_v53 = vadd.f32 %v1260_v51, %v2820_v11  ;;  %v1264_v54 = vrot.slane %v1256_v52, %v2806_v60 }
0x181f   :  { %v1269_v55 = vsel %vm1143_vm3, %v2870_v53, -inf  ;;  %v2876_v56 = vadd.f32 %v1264_v54, %v2820_v11 }
0x1820   :  { %1270 = vmax.xlane.f32.xlu1 %v1269_v55 }
0x1821   :  { %v1272_v57 = vsel %vm1143_vm3, %v2876_v56, -inf }
0x1822   :  { %1273 = vmax.xlane.f32.xlu0 %v1272_v57  ;;  %v2501_v57 = vmov 3  }
0x1831   :  { %1328 = vbcast.lane.b32.xlu1 %v1326_v0, 256 }
0x1838   :  { %1321 = vbcast.lane.b32.xlu0 %v1319_v3, 256 }
0x18a9   :  { %v2884_v6 = vpop.xlane.xlu1 %1270 }
0x18aa   :  { %vm1275_vm13 = vcmp.eq.f32.partialorder %v2870_v53, %v2884_v6 }
0x18ab   :  { %v2886_v7 = vpop.xlane.xlu0 %1273  ;;  %v1277_v15 = vsel %vm1275_vm13, %v2857_v36, 8 }
0x18ac   :  { %vm1276_vm0 = vcmp.eq.f32.partialorder %v2876_v56, %v2886_v7 }
0x18ad   :  { %v1329_v9 = vpop.permute.xlu1 %1328 }
0x18ae   :  { %v1333_v10 = vadd.f32 %v1329_v9, %v2886_v7 }
0x18af   :  { %v1322_v59 = vpop.permute.xlu0 %1321 }
0x18b0   :  { %v1332_v12 = vadd.f32 %v1322_v59, %v2884_v6  ;;  %1344 = vperm.xlu0 %2360, %v1333_v10  }
0x18b2   :  { %1341 = vperm.xlu1 %2363, %v1332_v12  }
0x18b4   :  { %1433 = vrot.lane.b32.xlu0 %v2742_v50, %s2497_s4 }
0x18b6   :  { %2364 = vset.pattern.permute.xlu1 %v2500_v13 }
0x18b7   :  { %1335 = vperm.xlu1 %2364, %v2853_v34  }
0x18bb   :  { %2365 = vset.pattern.permute.xlu1 %v2494_v8 }
0x192b   :  { %v1345_v17 = vpop.permute.xlu0 %1344 }
0x192c   :  { %v1353_v21 = vrot.slane %v1345_v17, %v2860_v24 }
0x192d   :  { %v1342_v16 = vpop.permute.xlu1 %1341 }
0x192e   :  { %v1349_v18 = vrot.slane %v1342_v16, %v2860_v24 }
0x192f   :  { %v1434_v40 = vpop.permute.xlu0 %1433 }
0x1930   :  { %v1354_v1 = vsel %vm1230_vm5, %v1353_v21, %v1349_v18  ;;  %v1436_v14 = vadd.f32 %v1434_v40, %v2787_v22 }
0x1932   :  { %v1336_v4 = vpop.permute.xlu1 %1335  ;;  %v1437_v42 = vadd.f32 %v1436_v14, %v2808_v63 }
0x1933   :  { %vm1337_vm7 = vcmp.eq.s32.totalorder %v1336_v4, 1 }
0x1934   :  { %v1356_v25 = vsel %vm1337_vm7, %v1354_v1, %v1233_v43  ;;  %v1449_v43 = vrot.slane %v1437_v42, %v2837_v23  ;;  %v1442_v45 = vrot.slane %v1437_v42, %v2806_v60 }
0x1935   :  { %v1364_v26 = vrot.slane %v1356_v25, %v2812_v5 }
0x1937   :  { %v1365_v29 = vcombine.high %v1364_v26, %v1364_v26  ;;  %v1372_v30 = vrot.slane %v1364_v26, %v2812_v5 }
0x1939   :  { %v1383_v31 = vrot.slane %v1372_v30, %v2806_v60  ;;  %v1379_v32 = vrot.slane %v1365_v29, %v2812_v5 }
0x193b   :  { %v2902_v33 = vadd.f32 %v1383_v31, %v2820_v11  ;;  %v1387_v35 = vrot.slane %v1379_v32, %v2806_v60 }
0x193d   :  { %v1392_v37 = vsel %vm1143_vm3, %v2902_v33, -inf  ;;  %v2908_v38 = vadd.f32 %v1387_v35, %v2820_v11 }
0x193e   :  { %1393 = vmax.xlane.f32.xlu1 %v1392_v37 }
0x193f   :  { %v1395_v39 = vsel %vm1143_vm3, %v2908_v38, -inf }
0x1940   :  { %1396 = vmax.xlane.f32.xlu0 %v1395_v39 }
0x194f   :  { %1451 = vbcast.lane.b32.xlu1 %v1449_v43, 256 }
0x1956   :  { %1444 = vbcast.lane.b32.xlu0 %v1442_v45, 256 }
0x19c7   :  { %v2916_v46 = vpop.xlane.xlu1 %1393 }
0x19c8   :  { %vm1398_vm15 = vcmp.eq.f32.partialorder %v2902_v33, %v2916_v46 }
0x19c9   :  { %v2918_v49 = vpop.xlane.xlu0 %1396  ;;  %v1400_v33 = vsel %vm1398_vm15, %v2857_v36, 8 }
0x19ca   :  { %vm1399_vm2 = vcmp.eq.f32.partialorder %v2908_v38, %v2918_v49 }
0x19cb   :  { %v1452_v51 = vpop.permute.xlu1 %1451  ;;  %v1401_v38 = vsel %vm1399_vm2, %v2857_v36, 8 }
0x19cc   :  { %v1456_v52 = vadd.f32 %v1452_v51, %v2918_v49 }
0x19cd   :  { %v1445_v54 = vpop.permute.xlu0 %1444 }
0x19ce   :  { %v1455_v55 = vadd.f32 %v1445_v54, %v2916_v46  ;;  %1467 = vperm.xlu0 %2360, %v1456_v52  }
0x19d0   :  { %1464 = vperm.xlu1 %2365, %v1455_v55  }
0x19d2   :  { %1556 = vrot.lane.b32.xlu0 %v2787_v22, %s2497_s4 }
0x19d4   :  { %2366 = vset.pattern.permute.xlu1 %v2501_v57 }
0x19d5   :  { %1458 = vperm.xlu1 %2366, %v2853_v34  }
0x19d9   :  { %2367 = vset.pattern.permute.xlu1 %v2494_v8 }
0x1a49   :  { %v1468_v61 = vpop.permute.xlu0 %1467 }
0x1a4a   :  { %v1476_v0 = vrot.slane %v1468_v61, %v2860_v24 }
0x1a4b   :  { %v1465_v58 = vpop.permute.xlu1 %1464 }
0x1a4c   :  { %v1472_v62 = vrot.slane %v1465_v58, %v2860_v24 }
0x1a4e   :  { %v1477_v9 = vsel %vm1230_vm5, %v1476_v0, %v1472_v62 }
0x1a50   :  { %v1459_v3 = vpop.permute.xlu1 %1458 }
0x1a51   :  { %vm1460_vm8 = vcmp.eq.s32.totalorder %v1459_v3, 1 }
0x1a52   :  { %v1479_v10 = vsel %vm1460_vm8, %v1477_v9, %v1356_v25  ;;  %v1557_v25 = vpop.permute.xlu0 %1556 }
0x1a53   :  { %v1487_v59 = vrot.slane %v1479_v10, %v2812_v5  ;;  %v1559_v26 = vadd.f32 %v1557_v25, %v2742_v50  ;;  %v2502_v50 = vmov 4  }
0x1a55   :  { %v1488_v22 = vcombine.high %v1487_v59, %v1487_v59  ;;  %v1495_v12 = vrot.slane %v1487_v59, %v2812_v5  ;;  %v1560_v29 = vadd.f32 %v1559_v26, %v2808_v63 }
0x1a57   :  { %v1506_v13 = vrot.slane %v1495_v12, %v2806_v60  ;;  %v1502_v16 = vrot.slane %v1488_v22, %v2812_v5  ;;  %v1572_v30 = vrot.slane %v1560_v29, %v2837_v23  ;;  %v1565_v31 = vrot.slane %v1560_v29, %v2806_v60 }
0x1a59   :  { %v2934_v17 = vadd.f32 %v1506_v13, %v2820_v11  ;;  %v1510_v18 = vrot.slane %v1502_v16, %v2806_v60 }
0x1a5b   :  { %v1515_v21 = vsel %vm1143_vm3, %v2934_v17, -inf  ;;  %v2940_v4 = vadd.f32 %v1510_v18, %v2820_v11 }
0x1a5c   :  { %1516 = vmax.xlane.f32.xlu1 %v1515_v21 }
0x1a5d   :  { %v1518_v1 = vsel %vm1143_vm3, %v2940_v4, -inf }
0x1a5e   :  { %1519 = vmax.xlane.f32.xlu0 %v1518_v1 }
0x1a6d   :  { %1574 = vbcast.lane.b32.xlu1 %v1572_v30, 256 }
0x1a74   :  { %1567 = vbcast.lane.b32.xlu0 %v1565_v31, 256 }
0x1ae5   :  { %v2948_v32 = vpop.xlane.xlu1 %1516 }
0x1ae6   :  { %vm1521_vm1 = vcmp.eq.f32.partialorder %v2934_v17, %v2948_v32 }
0x1ae7   :  { %v2950_v35 = vpop.xlane.xlu0 %1519 }
0x1ae8   :  { %vm1522_vm6 = vcmp.eq.f32.partialorder %v2940_v4, %v2950_v35 }
0x1ae9   :  { %v1575_v37 = vpop.permute.xlu1 %1574 }
0x1aea   :  { %v1579_v39 = vadd.f32 %v1575_v37, %v2950_v35 }
0x1aeb   :  { %v1568_v40 = vpop.permute.xlu0 %1567 }
0x1aec   :  { %v1578_v14 = vadd.f32 %v1568_v40, %v2948_v32  ;;  %1590 = vperm.xlu0 %2360, %v1579_v39   ;;  %v3072_v32 = vsel %vm1143_vm3, %v1400_v33, 2147483647 }
0x1aee   :  { %1587 = vperm.xlu1 %2367, %v1578_v14  }
0x1af0   :  { %1679 = vrot.lane.b32.xlu0 %v2739_v44, %s2497_s4 }
0x1af2   :  { %2368 = vset.pattern.permute.xlu1 %v2502_v50 }
0x1af3   :  { %1581 = vperm.xlu1 %2368, %v2853_v34  }
0x1af7   :  { %2369 = vset.pattern.permute.xlu1 %v2494_v8 }
0x1b67   :  { %v1591_v43 = vpop.permute.xlu0 %1590 }
0x1b68   :  { %v1599_v51 = vrot.slane %v1591_v43, %v2860_v24 }
0x1b69   :  { %v1588_v42 = vpop.permute.xlu1 %1587 }
0x1b6a   :  { %v1595_v45 = vrot.slane %v1588_v42, %v2860_v24 }
0x1b6b   :  { %v1680_v22 = vpop.permute.xlu0 %1679 }
0x1b6c   :  { %v1600_v54 = vsel %vm1230_vm5, %v1599_v51, %v1595_v45  ;;  %v1682_v12 = vadd.f32 %v1680_v22, %v2790_v28  ;;  %v2503_v28 = vmov 5  }
0x1b6e   :  { %v1582_v52 = vpop.permute.xlu1 %1581  ;;  %v1683_v13 = vadd.f32 %v1682_v12, %v2808_v63 }
0x1b6f   :  { %vm1583_vm9 = vcmp.eq.s32.totalorder %v1582_v52, 1 }
0x1b70   :  { %v1602_v55 = vsel %vm1583_vm9, %v1600_v54, %v1479_v10  ;;  %v1695_v16 = vrot.slane %v1683_v13, %v2837_v23  ;;  %v1688_v18 = vrot.slane %v1683_v13, %v2806_v60 }
0x1b71   :  { %v1610_v57 = vrot.slane %v1602_v55, %v2812_v5 }
0x1b73   :  { %v1611_v44 = vcombine.high %v1610_v57, %v1610_v57  ;;  %v1618_v58 = vrot.slane %v1610_v57, %v2812_v5 }
0x1b75   :  { %v1629_v61 = vrot.slane %v1618_v58, %v2806_v60  ;;  %v1625_v62 = vrot.slane %v1611_v44, %v2812_v5 }
0x1b77   :  { %v2966_v0 = vadd.f32 %v1629_v61, %v2820_v11  ;;  %v1633_v3 = vrot.slane %v1625_v62, %v2806_v60 }
0x1b79   :  { %v1638_v9 = vsel %vm1143_vm3, %v2966_v0, -inf  ;;  %v2972_v59 = vadd.f32 %v1633_v3, %v2820_v11 }
0x1b7a   :  { %1639 = vmax.xlane.f32.xlu1 %v1638_v9 }
0x1b7b   :  { %v1641_v10 = vsel %vm1143_vm3, %v2972_v59, -inf }
0x1b7c   :  { %1642 = vmax.xlane.f32.xlu0 %v1641_v10 }
0x1b8b   :  { %1697 = vbcast.lane.b32.xlu1 %v1695_v16, 256 }
0x1b92   :  { %1690 = vbcast.lane.b32.xlu0 %v1688_v18, 256 }
0x1c03   :  { %v2980_v21 = vpop.xlane.xlu1 %1639 }
0x1c04   :  { %vm1644_vm4 = vcmp.eq.f32.partialorder %v2966_v0, %v2980_v21 }
0x1c05   :  { %v2982_v1 = vpop.xlane.xlu0 %1642 }
0x1c06   :  { %vm1645_vm8 = vcmp.eq.f32.partialorder %v2972_v59, %v2982_v1 }
0x1c07   :  { %v1698_v25 = vpop.permute.xlu1 %1697 }
0x1c08   :  { %v1702_v26 = vadd.f32 %v1698_v25, %v2982_v1 }
0x1c09   :  { %v1691_v29 = vpop.permute.xlu0 %1690 }
0x1c0a   :  { %v1701_v30 = vadd.f32 %v1691_v29, %v2980_v21  ;;  %1713 = vperm.xlu0 %2360, %v1702_v26  }
0x1c0c   :  { %1710 = vperm.xlu1 %2369, %v1701_v30  }
0x1c0e   :  { %1802 = vrot.lane.b32.xlu0 %v2785_v19, %s2497_s4 }
0x1c10   :  { %2370 = vset.pattern.permute.xlu1 %v2503_v28 }
0x1c11   :  { %1704 = vperm.xlu1 %2370, %v2853_v34  }
0x1c15   :  { %2371 = vset.pattern.permute.xlu1 %v2494_v8 }
0x1c85   :  { %v1714_v37 = vpop.permute.xlu0 %1713 }
0x1c86   :  { %v1722_v40 = vrot.slane %v1714_v37, %v2860_v24 }
0x1c87   :  { %v1711_v31 = vpop.permute.xlu1 %1710 }
0x1c88   :  { %v1718_v39 = vrot.slane %v1711_v31, %v2860_v24 }
0x1c89   :  { %v1803_v61 = vpop.permute.xlu0 %1802 }
0x1c8a   :  { %v1723_v50 = vsel %vm1230_vm5, %v1722_v40, %v1718_v39  ;;  %v1805_v62 = vadd.f32 %v1803_v61, %v2782_v47  ;;  %v2504_v47 = vmov 6  }
0x1c8c   :  { %v1705_v14 = vpop.permute.xlu1 %1704  ;;  %v1806_v3 = vadd.f32 %v1805_v62, %v2808_v63  ;;  %v1646_v62 = vsel %vm1644_vm4, %v2857_v36, 8 }
0x1c8d   :  { %vm1706_vm10 = vcmp.eq.s32.totalorder %v1705_v14, 1  ;;  %v1152_v14 = vsel %vm1150_vm11, %v2857_v36, 8 }
0x1c8e   :  { %v1725_v42 = vsel %vm1706_vm10, %v1723_v50, %v1602_v55  ;;  %v1818_v9 = vrot.slane %v1806_v3, %v2837_v23  ;;  %v1811_v10 = vrot.slane %v1806_v3, %v2806_v60  ;;  %v3041_v6 = vsel %vm1143_vm3, %v1152_v14, 2147483647 }
0x1c8f   :  { %v1733_v43 = vrot.slane %v1725_v42, %v2812_v5  ;;  %v3101_v3 = vsel %vm1143_vm3, %v1401_v38, 2147483647 }
0x1c91   :  { %v1734_v19 = vcombine.high %v1733_v43, %v1733_v43  ;;  %v1741_v45 = vrot.slane %v1733_v43, %v2812_v5 }
0x1c93   :  { %v1752_v51 = vrot.slane %v1741_v45, %v2806_v60  ;;  %v1748_v52 = vrot.slane %v1734_v19, %v2812_v5  ;;  %v3051_v19 = vsel %vm1143_vm3, %v1277_v15, 2147483647  ;;  %v1278_v45 = vsel %vm1276_vm0, %v2857_v36, 8 }
0x1c95   :  { %v2998_v54 = vadd.f32 %v1752_v51, %v2820_v11  ;;  %v1756_v57 = vrot.slane %v1748_v52, %v2806_v60  ;;  %v1281_v51 = vshra.s32 %v3051_v19, 16 }
0x1c97   :  { %v1761_v44 = vsel %vm1143_vm3, %v2998_v54, -inf  ;;  %v3004_v58 = vadd.f32 %v1756_v57, %v2820_v11  ;;  %v3085_v49 = vcvt.s32.f32 %v1281_v51  ;;  %v1155_v51 = vand.u32 65535, %v3041_v6 }
0x1c98   :  { %1762 = vmax.xlane.f32.xlu1 %v1761_v44  ;;  %v3081_v44 = vsel %vm1143_vm3, %v1278_v45, 2147483647 }
0x1c99   :  { %v1764_v55 = vsel %vm1143_vm3, %v3004_v58, -inf  ;;  %v1296_v21 = vshra.s32 %v3081_v44, 16 }
0x1c9a   :  { %1765 = vmax.xlane.f32.xlu0 %v1764_v55  ;;  %v1404_v55 = vshra.s32 %v3072_v32, 16 }
0x1c9c   :  { %v3105_v4 = vcvt.s32.f32 %v1404_v55 }
0x1ca9   :  { %1820 = vbcast.lane.b32.xlu1 %v1818_v9, 256  ;;  %v1524_v9 = vsel %vm1522_vm6, %v2857_v36, 8 }
0x1cb0   :  { %1813 = vbcast.lane.b32.xlu0 %v1811_v10, 256  ;;  %v3111_v10 = vsel %vm1143_vm3, %v1646_v62, 2147483647 }
0x1cb1   :  { %v1650_v59 = vshra.s32 %v3111_v10, 16 }
0x1d21   :  { %v3012_v22 = vpop.xlane.xlu1 %1762 }
0x1d22   :  { %vm1767_vm7 = vcmp.eq.f32.partialorder %v2998_v54, %v3012_v22  ;;  %v3115_v54 = vcvt.s32.f32 %v1296_v21 }
0x1d23   :  { %v3014_v12 = vpop.xlane.xlu0 %1765 }
0x1d24   :  { %vm1768_vm9 = vcmp.eq.f32.partialorder %v3004_v58, %v3014_v12 }
0x1d25   :  { %v1821_v13 = vpop.permute.xlu1 %1820 }
0x1d26   :  { %v1825_v16 = vadd.f32 %v1821_v13, %v3014_v12  ;;  %v1769_v13 = vsel %vm1767_vm7, %v2857_v36, 8 }
0x1d27   :  { %v1814_v18 = vpop.permute.xlu0 %1813  ;;  %v3129_v1 = vsel %vm1143_vm3, %v1769_v13, 2147483647 }
0x1d28   :  { %v1824_v25 = vadd.f32 %v1814_v18, %v3012_v22  ;;  %1836 = vperm.xlu0 %2360, %v1825_v16   ;;  %v1419_v22 = vshra.s32 %v3101_v3, 16  ;;  %v3119_v16 = vsel %vm1143_vm3, %v1524_v9, 2147483647  ;;  %v1647_v18 = vsel %vm1645_vm8, %v2857_v36, 8 }
0x1d29   :  { %v1773_v58 = vshra.s32 %v3129_v1, 16 }
0x1d2a   :  { %1833 = vperm.xlu1 %2371, %v1824_v25  }
0x1d2e   :  { %2372 = vset.pattern.permute.xlu1 %v2504_v47  ;;  %v3132_v47 = vcvt.s32.f32 %v1419_v22 }
0x1d2f   :  { %1827 = vperm.xlu1 %2372, %v2853_v34  }
0x1d33   :  { %2373 = vset.pattern.permute.xlu1 %v2494_v8 }
0x1da3   :  { %v1837_v29 = vpop.permute.xlu0 %1836 }
0x1da4   :  { %v1845_v28 = vrot.slane %v1837_v29, %v2860_v24  ;;  %v3136_v29 = vsel %vm1143_vm3, %v1647_v18, 2147483647 }
0x1da5   :  { %v1834_v26 = vpop.permute.xlu1 %1833 }
0x1da6   :  { %v1841_v30 = vrot.slane %v1834_v26, %v2860_v24  ;;  %v1542_v26 = vshra.s32 %v3119_v16, 16 }
0x1da8   :  { %v1846_v37 = vsel %vm1230_vm5, %v1845_v28, %v1841_v30  ;;  %v1770_v30 = vsel %vm1768_vm9, %v2857_v36, 8  ;;  %v3140_v28 = vcvt.s32.f32 %v1650_v59  ;;  %v3144_v12 = vcvt.s32.f32 %v1542_v26 }
0x1daa   :  { %v1828_v31 = vpop.permute.xlu1 %1827 }
0x1dab   :  { %vm1829_vm12 = vcmp.eq.s32.totalorder %v1828_v31, 1  ;;  %v1665_v31 = vshra.s32 %v3136_v29, 16 }
0x1dac   :  { %v3025_v39 = vsel %vm1829_vm12, %v1846_v37, %v1725_v42  ;;  %v1153_v42 = vsel %vm1151_vm14, %v2857_v36, 8  ;;  %v3148_v37 = vsel %vm1143_vm3, %v1770_v30, 2147483647 }
0x1dad   :  { %v1856_v40 = vrot.slane %v3025_v39, %v2812_v5  ;;  %v3063_v7 = vsel %vm1143_vm3, %v1153_v42, 2147483647  ;;  %v3154_v14 = vcvt.s32.f32 %v1665_v31 }
0x1dae   :  { %v1171_v57 = vshra.s32 %v3063_v7, 16 }
0x1daf   :  { %v1857_v50 = vcombine.high %v1856_v40, %v1856_v40  ;;  %v1864_v43 = vrot.slane %v1856_v40, %v2812_v5  ;;  %v3151_v40 = vcvt.s32.f32 %v1773_v58 }
0x1db0   :  { %v3095_v0 = vcvt.s32.f32 %v1171_v57 }
0x1db1   :  { %v1875_v27 = vrot.slane %v1864_v43, %v2806_v60  ;;  %v1871_v53 = vrot.slane %v1857_v50, %v2812_v5  ;;  %v1156_v5 = vshra.s32 %v3041_v6, 16  ;;  %v1788_v50 = vshra.s32 %v3148_v37, 16 }
0x1db2   :  { %v1280_v6 = vand.u32 65535, %v3051_v19  ;;  %v1418_v19 = vand.u32 65535, %v3101_v3  ;;  %v1541_v3 = vand.u32 65535, %v3119_v16  ;;  %v1664_v16 = vand.u32 65535, %v3136_v29 }
0x1db3   :  { %v3047_v2 = vadd.f32 %v1875_v27, %v2820_v11  ;;  %v1879_v20 = vrot.slane %v1871_v53, %v2806_v60  ;;  %v3075_v52 = vcvt.s32.f32 %v1156_v5  ;;  %v3158_v43 = vcvt.s32.f32 %v1788_v50 }
0x1db4   :  { %v1282_v21 = vcvt.s32.f32 %v1280_v6  ;;  %v1420_v18 = vcvt.s32.f32 %v1418_v19  ;;  %v1543_v30 = vcvt.s32.f32 %v1541_v3  ;;  %v1787_v29 = vand.u32 65535, %v3148_v37 }
0x1db5   :  { %v1884_v46 = vsel %vm1143_vm3, %v3047_v2, -inf  ;;  %v3060_v56 = vadd.f32 %v1879_v20, %v2820_v11  ;;  %v1523_v11 = vsel %vm1521_vm1, %v2857_v36, 8 }
0x1db6   :  { %1885 = vmax.xlane.f32.xlu0 %v1884_v46  ;;  %v3091_v61 = vsel %vm1143_vm3, %v1523_v11, 2147483647  ;;  %v1157_v11 = vcvt.s32.f32 %v1155_v51 }
0x1db7   :  { %v1887_v17 = vsel %vm1143_vm3, %v3060_v56, -inf  ;;  %v1527_v35 = vshra.s32 %v3091_v61, 16 }
0x1db8   :  { %1888 = vmax.xlane.f32.xlu1 %v1887_v17 }
0x1db9   :  { %v3123_v25 = vcvt.s32.f32 %v1527_v35 }
0x1dba   :  { %1159 = vmin.xlane.f32.xlu0 %v3075_v52 }
0x1dbc   :  { %1284 = vmin.xlane.f32.xlu1 %v3085_v49 }
0x1dbe   :  { %1174 = vmin.xlane.f32.xlu0 %v3095_v0 }
0x1dc0   :  { %1407 = vmin.xlane.f32.xlu1 %v3105_v4 }
0x1dc2   :  { %1299 = vmin.xlane.f32.xlu0 %v3115_v54 }
0x1dc4   :  { %1530 = vmin.xlane.f32.xlu1 %v3123_v25 }
0x1dc6   :  { %1422 = vmin.xlane.f32.xlu0 %v3132_v47 }
0x1dc8   :  { %1653 = vmin.xlane.f32.xlu1 %v3140_v28 }
0x1dca   :  { %1545 = vmin.xlane.f32.xlu0 %v3144_v12 }
0x1dcc   :  { %1776 = vmin.xlane.f32.xlu1 %v3151_v40 }
0x1dce   :  { %1668 = vmin.xlane.f32.xlu0 %v3154_v14 }
0x1dd2   :  { %1791 = vmin.xlane.f32.xlu0 %v3158_v43 }
0x1e3f   :  { %v3161_v15 = vpop.xlane.xlu0 %1885 }
0x1e40   :  { %vm1890_vm10 = vcmp.eq.f32.partialorder %v3047_v2, %v3161_v15 }
0x1e41   :  { %v1892_v27 = vsel %vm1890_vm10, %v2857_v36, 8  ;;  %v3166_v53 = vpop.xlane.xlu1 %1888 }
0x1e42   :  { %vm1891_vm11 = vcmp.eq.f32.partialorder %v3060_v56, %v3166_v53  ;;  %v3171_v42 = vsel %vm1143_vm3, %v1892_v27, 2147483647  ;;  %v1666_v27 = vcvt.s32.f32 %v1664_v16 }
0x1e43   :  { %v1893_v20 = vsel %vm1891_vm11, %v2857_v36, 8  ;;  %v1896_v33 = vshra.s32 %v3171_v42, 16  ;;  %v3175_v5 = vpop.xlane.xlu0 %1159  ;;  %v1170_v36 = vand.u32 65535, %v3063_v7  ;;  %v1295_v7 = vand.u32 65535, %v3081_v44 }
0x1e44   :  { %v3178_v46 = vsel %vm1143_vm3, %v1893_v20, 2147483647  ;;  %vm1161_vm12 = vcmp.eq.f32.partialorder %v3075_v52, %v3175_v5  ;;  %v1526_v44 = vand.u32 65535, %v3091_v61  ;;  %v1649_v61 = vand.u32 65535, %v3111_v10 }
0x1e45   :  { %v3180_v2 = vcvt.s32.f32 %v1896_v33  ;;  %v1911_v45 = vshra.s32 %v3178_v46, 16  ;;  %v1162_v57 = vsel %vm1161_vm12, %v1157_v11, inf  ;;  %v3196_v38 = vpop.xlane.xlu1 %1284  ;;  %v1172_v55 = vcvt.s32.f32 %v1170_v36 }
0x1e46   :  { %vm1286_vm13 = vcmp.eq.f32.partialorder %v3085_v49, %v3196_v38  ;;  %v1297_v13 = vcvt.s32.f32 %v1295_v7  ;;  %v1651_v31 = vcvt.s32.f32 %v1649_v61  ;;  %v1772_v10 = vand.u32 65535, %v3129_v1 }
0x1e47   :  { %1899 = vmin.xlane.f32.xlu1 %v3180_v2  ;;  %v3185_v56 = vcvt.s32.f32 %v1911_v45  ;;  %v3191_v17 = vpop.xlane.xlu0 %1174  ;;  %v1287_v35 = vsel %vm1286_vm13, %v1282_v21, inf  ;;  %v2505_v1 = vmov 7   ;;  %v1403_v36 = vand.u32 65535, %v3072_v32 }
0x1e48   :  { %vm1176_vm3 = vcmp.eq.f32.partialorder %v3095_v0, %v3191_v17  ;;  %v1774_v33 = vcvt.s32.f32 %v1772_v10  ;;  %2374 = vset.pattern.permute.xlu0 %v2505_v1  ;;  %v1895_v11 = vand.u32 65535, %v3171_v42  ;;  %v1181_v19 = vcvt.f32.s32 %v3191_v17 }
0x1e49   :  { %1914 = vmin.xlane.f32.xlu0 %v3185_v56  ;;  %v1177_v52 = vsel %vm1176_vm3, %v1172_v55, inf  ;;  %v3203_v9 = vpop.xlane.xlu1 %1407  ;;  %v1291_v10 = vcvt.f32.s32 %v3196_v38  ;;  %vm1977_vm12 = vcmask 58368  }
0x1e4a   :  { %vm1409_vm8 = vcmp.eq.f32.partialorder %v3105_v4, %v3203_v9 }
0x1e4b   :  { %v3198_v62 = vpop.xlane.xlu0 %1299 }
0x1e4c   :  { %vm1301_vm14 = vcmp.eq.f32.partialorder %v3115_v54, %v3198_v62  ;;  %v1306_v3 = vcvt.f32.s32 %v3198_v62 }
0x1e4d   :  { %1163 = vmin.xlane.f32.xlu0 %v1162_v57  ;;  %v1302_v49 = vsel %vm1301_vm14, %v1297_v13, inf  ;;  %v3215_v22 = vpop.xlane.xlu1 %1530  ;;  %v1910_v57 = vand.u32 65535, %v3178_v46 }
0x1e4e   :  { %vm1532_vm0 = vcmp.eq.f32.partialorder %v3123_v25, %v3215_v22 }
0x1e4f   :  { %v3208_v0 = vpop.xlane.xlu0 %1422  ;;  %v1912_v7 = vcvt.s32.f32 %v1910_v57 }
0x1e50   :  { %vm1424_vm15 = vcmp.eq.f32.partialorder %v3132_v47, %v3208_v0 }
0x1e51   :  { %1178 = vmin.xlane.f32.xlu0 %v1177_v52  ;;  %v1425_v54 = vsel %vm1424_vm15, %v1420_v18, inf  ;;  %v3225_v47 = vpop.xlane.xlu1 %1653  ;;  %v1166_v52 = vcvt.f32.s32 %v3175_v5 }
0x1e52   :  { %vm1655_vm2 = vcmp.eq.f32.partialorder %v3140_v28, %v3225_v47  ;;  %v1660_v62 = vcvt.f32.s32 %v3225_v47 }
0x1e53   :  { %v3220_v59 = vpop.xlane.xlu0 %1545  ;;  %v1656_v50 = vsel %vm1655_vm2, %v1651_v31, inf }
0x1e54   :  { %vm1547_vm1 = vcmp.eq.f32.partialorder %v3144_v12, %v3220_v59  ;;  %v1552_v38 = vcvt.f32.s32 %v3220_v59 }
0x1e55   :  { %1288 = vmin.xlane.f32.xlu0 %v1287_v35  ;;  %v1548_v58 = vsel %vm1547_vm1, %v1543_v30, inf  ;;  %v3235_v12 = vpop.xlane.xlu1 %1776  ;;  %v1167_v35 = vshll.u32 %v1166_v52, 16  ;;  %v1537_v30 = vcvt.f32.s32 %v3215_v22  ;;  %v1661_v22 = vshll.u32 %v1660_v62, 16 }
0x1e56   :  { %vm1778_vm6 = vcmp.eq.f32.partialorder %v3151_v40, %v3235_v12  ;;  %v1405_v40 = vcvt.s32.f32 %v1403_v36  ;;  %v1553_v57 = vshll.u32 %v1552_v38, 16 }
0x1e57   :  { %v3230_v25 = vpop.xlane.xlu0 %1668  ;;  %v1779_v45 = vsel %vm1778_vm6, %v1774_v33, inf  ;;  %v1538_v16 = vshll.u32 %v1537_v30, 16  ;;  %v1429_v33 = vcvt.f32.s32 %v3208_v0 }
0x1e58   :  { %1925 = vrot.lane.b32.xlu1 %v2737_v41, %s2497_s4  ;;  %v1528_v41 = vcvt.s32.f32 %v1526_v44  ;;  %vm1670_vm4 = vcmp.eq.f32.partialorder %v3154_v14, %v3230_v25  ;;  %v1789_v14 = vcvt.s32.f32 %v1787_v29  ;;  %v1410_v37 = vsel %vm1409_vm8, %v1405_v40, inf }
0x1e59   :  { %1303 = vmin.xlane.f32.xlu0 %v1302_v49  ;;  %v1671_v20 = vsel %vm1670_vm4, %v1666_v27, inf  ;;  %v1292_v29 = vshll.u32 %v1291_v10, 16  ;;  %v1430_v40 = vshll.u32 %v1429_v33, 16 }
0x1e5a   :  { %v1533_v26 = vsel %vm1532_vm0, %v1528_v41, inf }
0x1e5b   :  { %v3240_v28 = vpop.xlane.xlu0 %1791 }
0x1e5c   :  { %vm1793_vm7 = vcmp.eq.f32.partialorder %v3158_v43, %v3240_v28  ;;  %v1897_v43 = vcvt.s32.f32 %v1895_v11 }
0x1e5d   :  { %1426 = vmin.xlane.f32.xlu0 %v1425_v54  ;;  %v1794_v51 = vsel %vm1793_vm7, %v1789_v14, inf }
0x1e61   :  { %1534 = vmin.xlane.f32.xlu0 %v1533_v26  ;;  %v1307_v26 = vshll.u32 %v1306_v3, 16 }
0x1e65   :  { %1549 = vmin.xlane.f32.xlu0 %v1548_v58 }
0x1e69   :  { %1657 = vmin.xlane.f32.xlu0 %v1656_v50 }
0x1e6d   :  { %1672 = vmin.xlane.f32.xlu0 %v1671_v20 }
0x1e71   :  { %1780 = vmin.xlane.f32.xlu0 %v1779_v45 }
0x1e75   :  { %1795 = vmin.xlane.f32.xlu0 %v1794_v51 }
0x1e7c   :  { %1411 = vmin.xlane.f32.xlu1 %v1410_v37 }
0x1ed0   :  { %v3249_v6 = vpop.xlane.xlu1 %1899 }
0x1ed1   :  { %vm1901_vm9 = vcmp.eq.f32.partialorder %v3180_v2, %v3249_v6 }
0x1ed2   :  { %v3253_v55 = vpop.xlane.xlu0 %1914  ;;  %v1902_v32 = vsel %vm1901_vm9, %v1897_v43, inf }
0x1ed3   :  { %vm1916_vm10 = vcmp.eq.f32.partialorder %v3185_v56, %v3253_v55  ;;  %1903 = vmin.xlane.f32.xlu0 %v1902_v32  ;;  %v1182_v56 = vshll.u32 %v1181_v19, 16 }
0x1ed4   :  { %v1926_v4 = vpop.permute.xlu1 %1925  ;;  %v1917_v21 = vsel %vm1916_vm10, %v1912_v7, inf }
0x1ed5   :  { %v1928_v42 = vadd.f32 %v1926_v4, %v2799_v48  ;;  %v1798_v4 = vcvt.f32.s32 %v3240_v28 }
0x1ed6   :  { %v1164_v46 = vpop.xlane.xlu0 %1163 }
0x1ed7   :  { %v1929_v2 = vadd.f32 %v1928_v42, %v2808_v63  ;;  %v1165_v13 = vcvt.f32.s32 %v1164_v46  ;;  %1918 = vmin.xlane.f32.xlu0 %v1917_v21  ;;  %v1799_v46 = vshll.u32 %v1798_v4, 16 }
0x1ed9   :  { %v3261_v49 = vadd.s32 %v1167_v35, %v1165_v13  ;;  %v1934_v5 = vrot.slane %v1929_v2, %v2806_v60  ;;  %v1941_v31 = vrot.slane %v1929_v2, %v2837_v23  ;;  %v1921_v2 = vcvt.f32.s32 %v3253_v55 }
0x1eda   :  { %v1179_v44 = vpop.xlane.xlu0 %1178 }
0x1edb   :  { %v1180_v18 = vcvt.f32.s32 %v1179_v44  ;;  %1936 = vbcast.lane.b32.xlu1 %v1934_v5, 256  ;;  %v1922_v5 = vshll.u32 %v1921_v2, 16 }
0x1edd   :  { %v3264_v54 = vadd.s32 %v1182_v56, %v1180_v18 }
0x1ede   :  { %v1289_v48 = vpop.xlane.xlu0 %1288 }
0x1edf   :  { %v1290_v20 = vcvt.f32.s32 %v1289_v48  ;;  %v1414_v48 = vcvt.f32.s32 %v3203_v9 }
0x1ee1   :  { %v1293_v1 = vadd.s32 %v1292_v29, %v1290_v20  ;;  %v1415_v3 = vshll.u32 %v1414_v48, 16 }
0x1ee2   :  { %v1304_v41 = vpop.xlane.xlu0 %1303 }
0x1ee3   :  { %v1305_v17 = vcvt.f32.s32 %v1304_v41  ;;  %v1783_v41 = vcvt.f32.s32 %v3235_v12 }
0x1ee5   :  { %v3267_v61 = vadd.s32 %v1307_v26, %v1305_v17  ;;  %v1784_v17 = vshll.u32 %v1783_v41, 16 }
0x1ee6   :  { %v1427_v63 = vpop.xlane.xlu0 %1426 }
0x1ee7   :  { %v1428_v51 = vcvt.f32.s32 %v1427_v63 }
0x1ee9   :  { %v1431_v47 = vadd.s32 %v1430_v40, %v1428_v51 }
0x1eea   :  { %v1535_v58 = vpop.xlane.xlu0 %1534 }
0x1eeb   :  { %v1536_v60 = vcvt.f32.s32 %v1535_v58 }
0x1eed   :  { %v1539_v50 = vadd.s32 %v1538_v16, %v1536_v60  ;;  %1943 = vbcast.lane.b32.xlu0 %v1941_v31, 256  ;;  %v2447_v60 = vld [vmem:[%s3338_s5 + $0x8] sm:$0x7] }
0x1eee   :  { %v1550_v27 = vpop.xlane.xlu0 %1549 }
0x1eef   :  { %v1551_v11 = vcvt.f32.s32 %v1550_v27 }
0x1ef1   :  { %1950 = vperm.xlu0 %2374, %v2853_v34   ;;  %v1675_v34 = vcvt.f32.s32 %v3230_v25  ;;  %v1554_v0 = vadd.s32 %v1553_v57, %v1551_v11 }
0x1ef2   :  { %v1658_v45 = vpop.xlane.xlu0 %1657 }
0x1ef3   :  { %v1659_v14 = vcvt.f32.s32 %v1658_v45  ;;  %v1676_v52 = vshll.u32 %v1675_v34, 16 }
0x1ef5   :  { %v1662_v36 = vadd.s32 %v1661_v22, %v1659_v14  ;;  %2375 = vset.pattern.permute.xlu0 %v2494_v8 }
0x1ef6   :  { %v1673_v37 = vpop.xlane.xlu0 %1672  ;;  %1986 = vperm.xlu0 %2375, %v1293_v1  }
0x1ef7   :  { %v1674_v32 = vcvt.f32.s32 %v1673_v37 }
0x1ef9   :  { %v1677_v8 = vadd.s32 %v1676_v52, %v1674_v32 }
0x1efa   :  { %v1781_v43 = vpop.xlane.xlu0 %1780  ;;  %1995 = vperm.xlu0 %2375, %v1431_v47  }
0x1efb   :  { %v1782_v26 = vcvt.f32.s32 %v1781_v43 }
0x1efd   :  { %v1785_v63 = vadd.s32 %v1784_v17, %v1782_v26 }
0x1efe   :  { %v1796_v7 = vpop.xlane.xlu0 %1795  ;;  %2001 = vperm.xlu0 %2375, %v1554_v0  }
0x1eff   :  { %v1797_v42 = vcvt.f32.s32 %v1796_v7 }
0x1f01   :  { %v1800_v59 = vadd.s32 %v1799_v46, %v1797_v42 }
0x1f02   :  { %2007 = vperm.xlu0 %2375, %v1677_v8  }
0x1f05   :  { %v1412_v21 = vpop.xlane.xlu1 %1411 }
0x1f06   :  { %2013 = vperm.xlu0 %2375, %v1800_v59  }
0x1f4d   :  { %v1937_v35 = vpop.permute.xlu1 %1936 }
0x1f4e   :  { %v1947_v19 = vadd.f32 %v1937_v35, %v3161_v15  ;;  %v1413_v15 = vcvt.f32.s32 %v1412_v21 }
0x1f50   :  { %1956 = vperm.xlu1 %2373, %v1947_v19   ;;  %v1416_v55 = vadd.s32 %v1415_v3, %v1413_v15 }
0x1f5c   :  { %v1904_v25 = vpop.xlane.xlu0 %1903 }
0x1f60   :  { %v1919_v13 = vpop.xlane.xlu0 %1918 }
0x1f61   :  { %v1920_v44 = vcvt.f32.s32 %v1919_v13 }
0x1f63   :  { %v1923_v28 = vadd.s32 %v1922_v5, %v1920_v44 }
0x1f64   :  { %v1944_v56 = vpop.permute.xlu0 %1943 }
0x1f65   :  { %v1948_v18 = vadd.f32 %v1944_v56, %v3166_v53  ;;  %2019 = vperm.xlu0 %2375, %v1923_v28   ;;  %v1906_v53 = vcvt.f32.s32 %v3249_v6  ;;  %v1975_v6 = vrot.slane %v2447_v60, %v2837_v23 }
0x1f67   :  { %1959 = vperm.xlu1 %2373, %v1948_v18   ;;  %v1907_v30 = vshll.u32 %v1906_v53, 16 }
0x1f6b   :  { %1980 = vperm.xlu1 %2373, %v3261_v49   ;;  %v1905_v49 = vcvt.f32.s32 %v1904_v25 }
0x1f6d   :  { %v1908_v9 = vadd.s32 %v1907_v30, %v1905_v49 }
0x1f6f   :  { %1983 = vperm.xlu1 %2373, %v3264_v54   ;;  %v1951_v54 = vpop.permute.xlu0 %1950 }
0x1f70   :  { %vm1952_vm11 = vcmp.eq.s32.totalorder %v1951_v54, 1 }
0x1f73   :  { %1989 = vperm.xlu1 %2373, %v3267_v61   ;;  %v1987_v31 = vpop.permute.xlu0 %1986 }
0x1f77   :  { %1992 = vperm.xlu1 %2373, %v1416_v55   ;;  %v1996_v20 = vpop.permute.xlu0 %1995 }
0x1f7b   :  { %1998 = vperm.xlu1 %2373, %v1539_v50  }
0x1f7f   :  { %2004 = vperm.xlu1 %2373, %v1662_v36  }
0x1f83   :  { %2010 = vperm.xlu1 %2373, %v1785_v63  }
0x1f87   :  { %2016 = vperm.xlu1 %2373, %v1908_v9  }
0x1fcb   :  { %v1957_v58 = vpop.permute.xlu1 %1956 }
0x1fcc   :  { %v1964_v61 = vrot.slane %v1957_v58, %v2860_v24 }
0x1fe2   :  { %v1960_v16 = vpop.permute.xlu1 %1959 }
0x1fe3   :  { %v1968_v12 = vrot.slane %v1960_v16, %v2860_v24 }
0x1fe5   :  { %v1969_v50 = vsel %vm1230_vm5, %v1968_v12, %v1964_v61 }
0x1fe6   :  { %v1981_v10 = vpop.permute.xlu1 %1980  ;;  %v1971_v27 = vsel %vm1952_vm11, %v1969_v50, %v3025_v39 }
0x1fe7   :  { %v1976_v62 = vadd.f32 %v1975_v6, %v1971_v27 }
0x1fe9   :  { %1978 = vst.msk [vmem:[#allocation2] sm:$0x3] %vm1977_vm12, %v1976_v62 }
0x1fea   :  { %v1984_v29 = vpop.permute.xlu1 %1983 }
0x1feb   :  { %2459 = shalt.err (!%p2456_p4)
}
0x1fec   :  { %2100 = dma.vmem_to_hbm [thread:$0]  %s2098_s9, 32, %s3340_s7, [#allocation3]   ;;  %v2024_v23 = vrot.slane %v1981_v10, %v2860_v24  ;;  %v2028_v39 = vrot.slane %v1984_v29, %v2860_v24  ;;  %v2032_v22 = vrot.slane %v1987_v31, %v2860_v24  ;;  %v2002_v1 = vpop.permute.xlu0 %2001  ;;  %v2044_v40 = vrot.slane %v1996_v20, %v2860_v24 }
0x1fed   :  { %v2052_v57 = vrot.slane %v2002_v1, %v2860_v24  ;;  %s2507_s7 = smov [#allocation4]  }
0x1fee   :  { %v2077_v33 = vsel %vm1230_vm5, %v2028_v39, %v2024_v23  ;;  %v1990_v45 = vpop.permute.xlu1 %1989  ;;  %s2106_s12 = sshll.u32 %s2507_s7, 4  ;;  %s2107_s12 = int_to_ptr.vmem [resolvable:$true] %s2106_s12 }
0x1fef   :  { %2084 = vst.msk [vmem:[#allocation4] sm:$0x3] %vm1977_vm12, %v2077_v33  ;;  %v2036_v14 = vrot.slane %v1990_v45, %v2860_v24  ;;  %s2468_s13 = scalar_lea.vmem %s2107_s12, 224  ;;  %p2473_p6 = scmp.lt.s32.totalorder %s2107_s12, %s2107_s12 }
0x1ff0   :  { %v2008_v47 = vpop.permute.xlu0 %2007  ;;  %p2469_p5 = scmp.ne.s32.totalorder %s2107_s12, %s2468_s13  ;;  %p2474_p7 = scmp.lt.s32.totalorder %s2468_s13, %s2468_s13 }
0x1ff1   :  { %v2078_v51 = vsel %vm1230_vm5, %v2036_v14, %v2032_v22  ;;  %v2060_v32 = vrot.slane %v2008_v47, %v2860_v24 }
0x1ff2   :  { %2085 = vst.msk [vmem:[#allocation4 + $0x2] sm:$0x3] %vm1977_vm12, %v2078_v51  ;;  %v1993_v36 = vpop.permute.xlu1 %1992  ;;  %p2475_p8 = por %p2474_p7, %p2473_p6 }
0x1ff3   :  { %v2040_v38 = vrot.slane %v1993_v36, %v2860_v24 }
0x1ff4   :  { %v2014_v4 = vpop.permute.xlu0 %2013  ;;  %p2476_p9 = pnand %p2475_p8, %p2469_p5 }
0x1ff5   :  { %v2079_v37 = vsel %vm1230_vm5, %v2044_v40, %v2040_v38  ;;  %v2068_v42 = vrot.slane %v2014_v4, %v2860_v24 }
0x1ff6   :  { %2086 = vst.msk [vmem:[#allocation4 + $0x4] sm:$0x3] %vm1977_vm12, %v2079_v37  ;;  %v1999_v11 = vpop.permute.xlu1 %1998 }
0x1ff7   :  { %v2048_v34 = vrot.slane %v1999_v11, %v2860_v24 }
0x1ff8   :  { %v2020_v59 = vpop.permute.xlu0 %2019 }
0x1ff9   :  { %v2080_v43 = vsel %vm1230_vm5, %v2052_v57, %v2048_v34  ;;  %v2076_v19 = vrot.slane %v2020_v59, %v2860_v24 }
0x1ffa   :  { %2087 = vst.msk [vmem:[#allocation4 + $0x6] sm:$0x3] %vm1977_vm12, %v2080_v43  ;;  %v2005_v0 = vpop.permute.xlu1 %2004 }
0x1ffb   :  { %v2056_v52 = vrot.slane %v2005_v0, %v2860_v24 }
0x1ffd   :  { %v2081_v7 = vsel %vm1230_vm5, %v2060_v32, %v2056_v52 }
0x1ffe   :  { %2088 = vst.msk [vmem:[#allocation4 + $0x8] sm:$0x3] %vm1977_vm12, %v2081_v7  ;;  %v2011_v8 = vpop.permute.xlu1 %2010 }
0x1fff   :  { %v2064_v46 = vrot.slane %v2011_v8, %v2860_v24 }
0x2001   :  { %v2082_v21 = vsel %vm1230_vm5, %v2068_v42, %v2064_v46 }
0x2002   :  { %2089 = vst.msk [vmem:[#allocation4 + $0xa] sm:$0x3] %vm1977_vm12, %v2082_v21  ;;  %v2017_v35 = vpop.permute.xlu1 %2016 }
0x2003   :  { %v2072_v25 = vrot.slane %v2017_v35, %v2860_v24 }
0x2005   :  { %v2083_v2 = vsel %vm1230_vm5, %v2076_v19, %v2072_v25 }
0x2006   :  { %2090 = vst.msk [vmem:[#allocation4 + $0xc] sm:$0x3] %vm1977_vm12, %v2083_v2 }
0x2007   :  { %2479 = shalt.err (!%p2476_p9)
}
0x2008   :  { %s2508_s14 = smov 2  }
0x2009   :  { %2112 = dma.vmem_to_hbm [thread:$0]  %s2107_s12, 224, %s3341_s8, [#allocation5], %s2496_s3, %s2496_s3, %s2508_s14  }
0x200a   :  { %2488 = dma.done.wait [#allocation3], 32  }
0x200b   :  { %2489 = vsyncadd [#allocation3], 4294967264 }
0x200c   :  { %2490 = dma.done.wait [#allocation5], 224  }
0x200d   :  { %2491 = vsyncadd [#allocation5], 4294967072 }
0x200e   :  { %2119 = vsyncpa [#allocation3], 1 }
0x200f   :  { %2120 = vsyncpa [#allocation5], 1 }

</bundles_post_ra>
